<compile_context>
chip_gen: v7x
topology: tpu7x:2x2x1
jax: 0.10.0
libtpu: 0.0.40
codegen_flags: <defaults>
</compile_context>

<pallas_src>
import jax
import jax.numpy as jnp
from jax import lax
from jax.experimental import pallas as pl
from jax.experimental.pallas import tpu as pltpu

K = 7      # conv kernel size
PAD = 3    # reflect padding


def _round_up(x, m):
    return (x + m - 1) // m * m


def _largest_divisor_leq(n, cap):
    for d in range(min(n, cap), 0, -1):
        if n % d == 0:
            return d
    return 1


def _pick_c_tile(C, per_c_bytes, budget_bytes, cap=64):
    # Valid channel tiles: divisors of C that are a multiple of 8 (block-shape
    # sublane rule) or the full channel dim; pick the largest one that fits the
    # padded per-buffer VMEM budget and the unroll cap.
    cands = [d for d in range(1, C + 1) if C % d == 0 and (d % 8 == 0 or d == C)]
    good = [d for d in cands
            if d <= cap and _round_up(d, 8) * per_c_bytes <= budget_bytes]
    return max(good) if good else min(cands)


def _make_kernel(B, C_TILE, H, W):
    HW = H * W
    Wp = W + 2 * PAD            # per-map padded width (one lane segment)
    Ltot = 2 * B * Wp           # packed pad-map lane width: [avg|max] per image
    Lacc = Ltot - 2 * PAD       # conv accumulator lane width

    def kernel(x_ref, w_ref, bias_ref, o_ref, sum_ref, max_ref, pad_ref):
        cb = pl.program_id(1)

        @pl.when(cb == 0)
        def _():
            sum_ref[...] = jnp.zeros(sum_ref.shape, jnp.float32)
            max_ref[...] = jnp.full(max_ref.shape, -jnp.inf, jnp.float32)

        # ---- fused channel-chunk reduction, lane-dense (B, H*W) ----
        s = x_ref[:, 0, :].astype(jnp.float32)
        mx = s
        for c in range(1, C_TILE):
            v = x_ref[:, c, :].astype(jnp.float32)
            s = s + v
            mx = jnp.maximum(mx, v)
        sum_ref[...] = sum_ref[...] + s
        max_ref[...] = jnp.maximum(max_ref[...], mx)

        # ---- finalize on the last channel chunk: reflect pad + 7x7 conv ----
        @pl.when(cb == pl.num_programs(1) - 1)
        def _():
            # 1) Build packed reflect-padded maps.  Image b: segment 0 holds the
            #    raw channel SUM (1/C is folded into the conv weights), segment 1
            #    holds the channel MAX.  Borders via narrow ref-to-ref copies.
            for b in range(B):
                for seg, src in enumerate((sum_ref, max_ref)):
                    base = (2 * b + seg) * Wp
                    # interior rows straight from the lane-dense accumulator
                    for r in range(H):
                        pad_ref[PAD + r, base + PAD:base + PAD + W] = (
                            src[b, r * W:(r + 1) * W])
                    # reflected columns on the interior rows ...
                    for dq, sq in ((0, 6), (1, 5), (2, 4),
                                   (W + 3, W + 1), (W + 4, W), (W + 5, W - 1)):
                        pad_ref[PAD:PAD + H, base + dq:base + dq + 1] = (
                            pad_ref[PAD:PAD + H, base + sq:base + sq + 1])
                    # ... then reflected rows over the full padded width
                    for dr, sr in ((0, 6), (1, 5), (2, 4),
                                   (H + 3, H + 1), (H + 4, H), (H + 5, H - 1)):
                        pad_ref[dr:dr + 1, base:base + Wp] = (
                            pad_ref[sr:sr + 1, base:base + Wp])

            # 2) 49-tap conv over the packed maps.  Lane-structured weight rows
            #    carry the avg weight on avg lanes and the max weight on max
            #    lanes, so each tap is one mul + one add for both paths.  The 7
            #    horizontal (lane) shifts are hoisted out of the vertical loop.
            acc = jnp.zeros((H, Lacc), jnp.float32)
            for kw in range(K):
                slab = pad_ref[:, kw:kw + Lacc]            # (H+6, Lacc)
                for kh in range(K):
                    acc = acc + w_ref[kh * K + kw] * slab[kh:kh + H, :]

            # 3) combine avg/max partial sums per image, add bias, store.
            bias = bias_ref[0]
            for b in range(B):
                base = 2 * b * Wp
                out_b = (acc[:, base:base + W]
                         + acc[:, base + Wp:base + Wp + W] + bias)
                o_ref[b, 0] = out_b.astype(o_ref.dtype)

    return kernel


def spatial_attention(x, weight, bias):
    """x: (N, C, H, W); weight: (1, 2, 7, 7); bias: (1,). Returns (N, 1, H, W) f32."""
    N, C, H, W = x.shape
    assert H >= PAD + 1 and W >= PAD + 1, "reflect padding (pad=3) needs H, W >= 4"
    HW = H * W
    Wp, Hp = W + 2 * PAD, H + 2 * PAD

    # Images per grid step: amortize per-step overhead, but keep >= 2 steps on
    # the 'parallel' axis when possible so v7x's two TensorCores both get work.
    B = _largest_divisor_leq(N, 8)
    if N // B < 2 and B > 1:
        B = _largest_divisor_leq(N, max(1, B // 2))

    # Channel tile sized from the *padded* VMEM footprint of the lane-dense
    # (B, C_TILE, H*W) input block, with a generation-aware budget.
    try:
        info = pltpu.get_tpu_info()
        vmem_cap = int(getattr(info, "vmem_capacity_bytes", 64 << 20))
    except Exception:  # pragma: no cover - conservative fallback
        vmem_cap = 64 << 20
    per_buf_budget = min(vmem_cap // 16, 4 << 20)
    per_c_bytes = B * _round_up(HW, 128) * x.dtype.itemsize
    C_TILE = _pick_c_tile(C, per_c_bytes, per_buf_budget, cap=64)

    Ltot = 2 * B * Wp
    Lacc = Ltot - 2 * PAD

    # Lane-structured conv weights: row t = tap (kh, kw) flattened; avg-segment
    # lanes carry weight[0,0]/C (1/C folded in), max-segment lanes weight[0,1].
    w = weight.astype(jnp.float32)
    w_avg = (w[0, 0] / jnp.float32(C)).reshape(K * K, 1)
    w_max = w[0, 1].reshape(K * K, 1)
    lane_idx = jnp.arange(Lacc, dtype=jnp.int32)
    is_avg = (lane_idx % (2 * Wp)) < Wp
    w_conv = jnp.where(is_avg[None, :], w_avg, w_max)            # (49, Lacc)
    b_vec = bias.reshape(-1).astype(jnp.float32)                 # (1,) -> SMEM

    x_flat = x.reshape(N, C, HW)   # free: H*W is contiguous in NCHW

    # Explicit VMEM budget from padded shapes (double-buffered blocks + scratch).
    in_blk = B * _round_up(C_TILE, 8) * _round_up(HW, 128) * x.dtype.itemsize
    out_blk = B * _round_up(H, 8) * _round_up(W, 128) * 4
    w_blk = _round_up(K * K, 8) * _round_up(Lacc, 128) * 4
    scratch = (2 * _round_up(B, 8) * _round_up(HW, 128) * 4
               + _round_up(Hp, 8) * _round_up(Ltot, 128) * 4)
    vmem_need = 2 * (in_blk + out_blk + w_blk) + scratch
    vmem_limit = int(min(max(vmem_need + (2 << 20), 8 << 20), 64 << 20))

    kernel = _make_kernel(B, C_TILE, H, W)
    return pl.pallas_call(
        kernel,
        out_shape=jax.ShapeDtypeStruct((N, 1, H, W), jnp.float32),
        grid=(N // B, C // C_TILE),
        in_specs=[
            pl.BlockSpec((B, C_TILE, HW), lambda nb, cb: (nb, cb, 0)),
            pl.BlockSpec((K * K, Lacc), lambda nb, cb: (0, 0)),
            pl.BlockSpec(memory_space=pltpu.MemorySpace.SMEM),
        ],
        out_specs=pl.BlockSpec((B, 1, H, W), lambda nb, cb: (nb, 0, 0, 0)),
        scratch_shapes=[
            pltpu.VMEM((B, HW), jnp.float32),     # running channel sum (lane-dense)
            pltpu.VMEM((B, HW), jnp.float32),     # running channel max (lane-dense)
            pltpu.VMEM((Hp, Ltot), jnp.float32),  # packed reflect-padded avg|max maps
        ],
        compiler_params=pltpu.CompilerParams(
            dimension_semantics=("parallel", "arbitrary"),
            vmem_limit_bytes=vmem_limit),
    )(x_flat, w_conv, b_vec)


def _reference(x, weight, bias):
    # Pure-JAX reference matching the PyTorch module.
    x_avg = jnp.mean(x, axis=1, keepdims=True)
    x_max = jnp.max(x, axis=1, keepdims=True)
    x2 = jnp.concatenate([x_avg, x_max], axis=1)                     # (N,2,H,W)
    x2p = jnp.pad(x2, ((0, 0), (0, 0), (PAD, PAD), (PAD, PAD)), mode="reflect")
    return lax.conv_general_dilated(
        x2p, weight, window_strides=(1, 1), padding="VALID",
        dimension_numbers=("NCHW", "OIHW", "NCHW")) + bias.reshape(1, 1, 1, 1)


if __name__ == "__main__":
    key = jax.random.PRNGKey(0)
    kx, kw, kb = jax.random.split(key, 3)

    N, C, H, W = 2, 4, 16, 16
    x = jax.random.normal(kx, (N, C, H, W), dtype=jnp.float32)

    # Deterministic Conv2d(2, 1, 7) init (PyTorch-style uniform +-1/sqrt(fan_in)).
    fan_in = 2 * K * K
    bound = 1.0 / (fan_in ** 0.5)
    weight = jax.random.uniform(kw, (1, 2, K, K), jnp.float32, -bound, bound)
    bias = jax.random.uniform(kb, (1,), jnp.float32, -bound, bound)

    out = spatial_attention(x, weight, bias)
    out = jax.block_until_ready(out)

    ref = _reference(x, weight, bias)
    assert out.shape == (N, 1, H, W), out.shape
    assert jnp.allclose(out, ref, atol=1e-5, rtol=1e-5), "mismatch vs reference"

    print("KERNEL_OK")
</pallas_src>

<mosaic_0001>
module attributes {stable_mosaic.version = 11 : i64} {
  func.func @kernel(%arg0: i32, %arg1: i32, %arg2: memref<1x4x256xf32, #tpu.memory_space<vmem>>, %arg3: memref<49x38xf32, #tpu.memory_space<vmem>>, %arg4: memref<1xf32, #tpu.memory_space<smem>>, %arg5: memref<1x1x16x16xf32, #tpu.memory_space<vmem>>, %arg6: memref<1x256xf32, #tpu.memory_space<vmem>>, %arg7: memref<1x256xf32, #tpu.memory_space<vmem>>, %arg8: memref<22x44xf32, #tpu.memory_space<vmem>>) attributes {dimension_semantics = [#tpu.dimension_semantics<parallel>, #tpu.dimension_semantics<arbitrary>], iteration_bounds = array<i64: 2, 1>, scalar_prefetch = 0 : i64, scratch_operands = 3 : i64, tpu.core_type = #tpu.core_type<tc>, window_params = [{transform_indices = @transform_0, window_bounds = array<i64: 1, 4, 256>}, {pipeline_mode = #tpu.pipeline_mode<synchronous>, transform_indices = @transform_1, window_bounds = array<i64: 49, 38>}, {transform_indices = @transform_2, window_bounds = array<i64: 1>}, {transform_indices = @transform_3, window_bounds = array<i64: 1, 1, 16, 16>}]} {
    %c0_i32 = arith.constant 0 : i32
    %0 = arith.cmpi eq, %arg1, %c0_i32 : i32
    %1 = arith.extui %0 : i1 to i32
    %c0_i32_0 = arith.constant 0 : i32
    %2 = arith.cmpi ne, %1, %c0_i32_0 : i32
    scf.if %2 {
      %cst = arith.constant 0.000000e+00 : f32
      %26 = vector.broadcast %cst : f32 to vector<1x256xf32>
      %c0_19 = arith.constant 0 : index
      %c0_20 = arith.constant 0 : index
      %27 = vector.load %arg6[%c0_19, %c0_20] : memref<1x256xf32, #tpu.memory_space<vmem>>, vector<1x256xf32>
      tpu.vector_store %arg6[%c0_19, %c0_20], %26 {strides = array<i32>} : memref<1x256xf32, #tpu.memory_space<vmem>>, vector<1x256xf32>,
      %cst_21 = arith.constant 0xFF800000 : f32
      %28 = vector.broadcast %cst_21 : f32 to vector<1x256xf32>
      %c0_22 = arith.constant 0 : index
      %c0_23 = arith.constant 0 : index
      %29 = vector.load %arg7[%c0_22, %c0_23] : memref<1x256xf32, #tpu.memory_space<vmem>>, vector<1x256xf32>
      tpu.vector_store %arg7[%c0_22, %c0_23], %28 {strides = array<i32>} : memref<1x256xf32, #tpu.memory_space<vmem>>, vector<1x256xf32>,
    } else {
    }
    %c0 = arith.constant 0 : index
    %c0_1 = arith.constant 0 : index
    %c0_2 = arith.constant 0 : index
    %3 = vector.load %arg2[%c0, %c0_1, %c0_2] : memref<1x4x256xf32, #tpu.memory_space<vmem>>, vector<1x1x256xf32>
    %4 = vector.shape_cast %3 : vector<1x1x256xf32> to vector<1x256xf32>
    %c0_3 = arith.constant 0 : index
    %c1 = arith.constant 1 : index
    %c0_4 = arith.constant 0 : index
    %5 = vector.load %arg2[%c0_3, %c1, %c0_4] : memref<1x4x256xf32, #tpu.memory_space<vmem>>, vector<1x1x256xf32>
    %6 = vector.shape_cast %5 : vector<1x1x256xf32> to vector<1x256xf32>
    %7 = arith.addf %4, %6 : vector<1x256xf32>
    %8 = arith.maximumf %4, %6 : vector<1x256xf32>
    %c0_5 = arith.constant 0 : index
    %c2 = arith.constant 2 : index
    %c0_6 = arith.constant 0 : index
    %9 = vector.load %arg2[%c0_5, %c2, %c0_6] : memref<1x4x256xf32, #tpu.memory_space<vmem>>, vector<1x1x256xf32>
    %10 = vector.shape_cast %9 : vector<1x1x256xf32> to vector<1x256xf32>
    %11 = arith.addf %7, %10 : vector<1x256xf32>
    %12 = arith.maximumf %8, %10 : vector<1x256xf32>
    %c0_7 = arith.constant 0 : index
    %c3 = arith.constant 3 : index
    %c0_8 = arith.constant 0 : index
    %13 = vector.load %arg2[%c0_7, %c3, %c0_8] : memref<1x4x256xf32, #tpu.memory_space<vmem>>, vector<1x1x256xf32>
    %14 = vector.shape_cast %13 : vector<1x1x256xf32> to vector<1x256xf32>
    %15 = arith.addf %11, %14 : vector<1x256xf32>
    %16 = arith.maximumf %12, %14 : vector<1x256xf32>
    %c0_9 = arith.constant 0 : index
    %c0_10 = arith.constant 0 : index
    %17 = vector.load %arg6[%c0_9, %c0_10] : memref<1x256xf32, #tpu.memory_space<vmem>>, vector<1x256xf32>
    %18 = arith.addf %17, %15 : vector<1x256xf32>
    %c0_11 = arith.constant 0 : index
    %c0_12 = arith.constant 0 : index
    %19 = vector.load %arg6[%c0_11, %c0_12] : memref<1x256xf32, #tpu.memory_space<vmem>>, vector<1x256xf32>
    tpu.vector_store %arg6[%c0_11, %c0_12], %18 {strides = array<i32>} : memref<1x256xf32, #tpu.memory_space<vmem>>, vector<1x256xf32>,
    %c0_13 = arith.constant 0 : index
    %c0_14 = arith.constant 0 : index
    %20 = vector.load %arg7[%c0_13, %c0_14] : memref<1x256xf32, #tpu.memory_space<vmem>>, vector<1x256xf32>
    %21 = arith.maximumf %20, %16 : vector<1x256xf32>
    %c0_15 = arith.constant 0 : index
    %c0_16 = arith.constant 0 : index
    %22 = vector.load %arg7[%c0_15, %c0_16] : memref<1x256xf32, #tpu.memory_space<vmem>>, vector<1x256xf32>
    tpu.vector_store %arg7[%c0_15, %c0_16], %21 {strides = array<i32>} : memref<1x256xf32, #tpu.memory_space<vmem>>, vector<1x256xf32>,
    %c0_i32_17 = arith.constant 0 : i32
    %23 = arith.cmpi eq, %arg1, %c0_i32_17 : i32
    %24 = arith.extui %23 : i1 to i32
    %c0_i32_18 = arith.constant 0 : i32
    %25 = arith.cmpi ne, %24, %c0_i32_18 : i32
    scf.if %25 {
      %c0_19 = arith.constant 0 : index
      %c0_20 = arith.constant 0 : index
      %26 = vector.load %arg6[%c0_19, %c0_20] : memref<1x256xf32, #tpu.memory_space<vmem>>, vector<1x16xf32>
      %27 = vector.shape_cast %26 : vector<1x16xf32> to vector<16xf32>
      %c3_21 = arith.constant 3 : index
      %c3_22 = arith.constant 3 : index
      %28 = vector.load %arg8[%c3_21, %c3_22] : memref<22x44xf32, #tpu.memory_space<vmem>>, vector<1x16xf32>
      %29 = vector.shape_cast %28 : vector<1x16xf32> to vector<16xf32>
      %30 = vector.shape_cast %27 : vector<16xf32> to vector<1x16xf32>
      tpu.vector_store %arg8[%c3_21, %c3_22], %30 {strides = array<i32>} : memref<22x44xf32, #tpu.memory_space<vmem>>, vector<1x16xf32>,
      %c0_23 = arith.constant 0 : index
      %c16 = arith.constant 16 : index
      %31 = vector.load %arg6[%c0_23, %c16] : memref<1x256xf32, #tpu.memory_space<vmem>>, vector<1x16xf32>
      %32 = vector.shape_cast %31 : vector<1x16xf32> to vector<16xf32>
      %c4 = arith.constant 4 : index
      %c3_24 = arith.constant 3 : index
      %33 = vector.load %arg8[%c4, %c3_24] : memref<22x44xf32, #tpu.memory_space<vmem>>, vector<1x16xf32>
      %34 = vector.shape_cast %33 : vector<1x16xf32> to vector<16xf32>
      %35 = vector.shape_cast %32 : vector<16xf32> to vector<1x16xf32>
      tpu.vector_store %arg8[%c4, %c3_24], %35 {strides = array<i32>} : memref<22x44xf32, #tpu.memory_space<vmem>>, vector<1x16xf32>,
      %c0_25 = arith.constant 0 : index
      %c32 = arith.constant 32 : index
      %36 = vector.load %arg6[%c0_25, %c32] : memref<1x256xf32, #tpu.memory_space<vmem>>, vector<1x16xf32>
      %37 = vector.shape_cast %36 : vector<1x16xf32> to vector<16xf32>
      %c5 = arith.constant 5 : index
      %c3_26 = arith.constant 3 : index
      %38 = vector.load %arg8[%c5, %c3_26] : memref<22x44xf32, #tpu.memory_space<vmem>>, vector<1x16xf32>
      %39 = vector.shape_cast %38 : vector<1x16xf32> to vector<16xf32>
      %40 = vector.shape_cast %37 : vector<16xf32> to vector<1x16xf32>
      tpu.vector_store %arg8[%c5, %c3_26], %40 {strides = array<i32>} : memref<22x44xf32, #tpu.memory_space<vmem>>, vector<1x16xf32>,
      %c0_27 = arith.constant 0 : index
      %c48 = arith.constant 48 : index
      %41 = vector.load %arg6[%c0_27, %c48] : memref<1x256xf32, #tpu.memory_space<vmem>>, vector<1x16xf32>
      %42 = vector.shape_cast %41 : vector<1x16xf32> to vector<16xf32>
      %c6 = arith.constant 6 : index
      %c3_28 = arith.constant 3 : index
      %43 = vector.load %arg8[%c6, %c3_28] : memref<22x44xf32, #tpu.memory_space<vmem>>, vector<1x16xf32>
      %44 = vector.shape_cast %43 : vector<1x16xf32> to vector<16xf32>
      %45 = vector.shape_cast %42 : vector<16xf32> to vector<1x16xf32>
      tpu.vector_store %arg8[%c6, %c3_28], %45 {strides = array<i32>} : memref<22x44xf32, #tpu.memory_space<vmem>>, vector<1x16xf32>,
      %c0_29 = arith.constant 0 : index
      %c64 = arith.constant 64 : index
      %46 = vector.load %arg6[%c0_29, %c64] : memref<1x256xf32, #tpu.memory_space<vmem>>, vector<1x16xf32>
      %47 = vector.shape_cast %46 : vector<1x16xf32> to vector<16xf32>
      %c7 = arith.constant 7 : index
      %c3_30 = arith.constant 3 : index
      %48 = vector.load %arg8[%c7, %c3_30] : memref<22x44xf32, #tpu.memory_space<vmem>>, vector<1x16xf32>
      %49 = vector.shape_cast %48 : vector<1x16xf32> to vector<16xf32>
      %50 = vector.shape_cast %47 : vector<16xf32> to vector<1x16xf32>
      tpu.vector_store %arg8[%c7, %c3_30], %50 {strides = array<i32>} : memref<22x44xf32, #tpu.memory_space<vmem>>, vector<1x16xf32>,
      %c0_31 = arith.constant 0 : index
      %c80 = arith.constant 80 : index
      %51 = vector.load %arg6[%c0_31, %c80] : memref<1x256xf32, #tpu.memory_space<vmem>>, vector<1x16xf32>
      %52 = vector.shape_cast %51 : vector<1x16xf32> to vector<16xf32>
      %c8 = arith.constant 8 : index
      %c3_32 = arith.constant 3 : index
      %53 = vector.load %arg8[%c8, %c3_32] : memref<22x44xf32, #tpu.memory_space<vmem>>, vector<1x16xf32>
      %54 = vector.shape_cast %53 : vector<1x16xf32> to vector<16xf32>
      %55 = vector.shape_cast %52 : vector<16xf32> to vector<1x16xf32>
      tpu.vector_store %arg8[%c8, %c3_32], %55 {strides = array<i32>} : memref<22x44xf32, #tpu.memory_space<vmem>>, vector<1x16xf32>,
      %c0_33 = arith.constant 0 : index
      %c96 = arith.constant 96 : index
      %56 = vector.load %arg6[%c0_33, %c96] : memref<1x256xf32, #tpu.memory_space<vmem>>, vector<1x16xf32>
      %57 = vector.shape_cast %56 : vector<1x16xf32> to vector<16xf32>
      %c9 = arith.constant 9 : index
      %c3_34 = arith.constant 3 : index
      %58 = vector.load %arg8[%c9, %c3_34] : memref<22x44xf32, #tpu.memory_space<vmem>>, vector<1x16xf32>
      %59 = vector.shape_cast %58 : vector<1x16xf32> to vector<16xf32>
      %60 = vector.shape_cast %57 : vector<16xf32> to vector<1x16xf32>
      tpu.vector_store %arg8[%c9, %c3_34], %60 {strides = array<i32>} : memref<22x44xf32, #tpu.memory_space<vmem>>, vector<1x16xf32>,
      %c0_35 = arith.constant 0 : index
      %c112 = arith.constant 112 : index
      %61 = vector.load %arg6[%c0_35, %c112] : memref<1x256xf32, #tpu.memory_space<vmem>>, vector<1x16xf32>
      %62 = vector.shape_cast %61 : vector<1x16xf32> to vector<16xf32>
      %c10 = arith.constant 10 : index
      %c3_36 = arith.constant 3 : index
      %63 = vector.load %arg8[%c10, %c3_36] : memref<22x44xf32, #tpu.memory_space<vmem>>, vector<1x16xf32>
      %64 = vector.shape_cast %63 : vector<1x16xf32> to vector<16xf32>
      %65 = vector.shape_cast %62 : vector<16xf32> to vector<1x16xf32>
      tpu.vector_store %arg8[%c10, %c3_36], %65 {strides = array<i32>} : memref<22x44xf32, #tpu.memory_space<vmem>>, vector<1x16xf32>,
      %c0_37 = arith.constant 0 : index
      %c128 = arith.constant 128 : index
      %66 = vector.load %arg6[%c0_37, %c128] : memref<1x256xf32, #tpu.memory_space<vmem>>, vector<1x16xf32>
      %67 = vector.shape_cast %66 : vector<1x16xf32> to vector<16xf32>
      %c11 = arith.constant 11 : index
      %c3_38 = arith.constant 3 : index
      %68 = vector.load %arg8[%c11, %c3_38] : memref<22x44xf32, #tpu.memory_space<vmem>>, vector<1x16xf32>
      %69 = vector.shape_cast %68 : vector<1x16xf32> to vector<16xf32>
      %70 = vector.shape_cast %67 : vector<16xf32> to vector<1x16xf32>
      tpu.vector_store %arg8[%c11, %c3_38], %70 {strides = array<i32>} : memref<22x44xf32, #tpu.memory_space<vmem>>, vector<1x16xf32>,
      %c0_39 = arith.constant 0 : index
      %c144 = arith.constant 144 : index
      %71 = vector.load %arg6[%c0_39, %c144] : memref<1x256xf32, #tpu.memory_space<vmem>>, vector<1x16xf32>
      %72 = vector.shape_cast %71 : vector<1x16xf32> to vector<16xf32>
      %c12 = arith.constant 12 : index
      %c3_40 = arith.constant 3 : index
      %73 = vector.load %arg8[%c12, %c3_40] : memref<22x44xf32, #tpu.memory_space<vmem>>, vector<1x16xf32>
      %74 = vector.shape_cast %73 : vector<1x16xf32> to vector<16xf32>
      %75 = vector.shape_cast %72 : vector<16xf32> to vector<1x16xf32>
      tpu.vector_store %arg8[%c12, %c3_40], %75 {strides = array<i32>} : memref<22x44xf32, #tpu.memory_space<vmem>>, vector<1x16xf32>,
      %c0_41 = arith.constant 0 : index
      %c160 = arith.constant 160 : index
      %76 = vector.load %arg6[%c0_41, %c160] : memref<1x256xf32, #tpu.memory_space<vmem>>, vector<1x16xf32>
      %77 = vector.shape_cast %76 : vector<1x16xf32> to vector<16xf32>
      %c13 = arith.constant 13 : index
      %c3_42 = arith.constant 3 : index
      %78 = vector.load %arg8[%c13, %c3_42] : memref<22x44xf32, #tpu.memory_space<vmem>>, vector<1x16xf32>
      %79 = vector.shape_cast %78 : vector<1x16xf32> to vector<16xf32>
      %80 = vector.shape_cast %77 : vector<16xf32> to vector<1x16xf32>
      tpu.vector_store %arg8[%c13, %c3_42], %80 {strides = array<i32>} : memref<22x44xf32, #tpu.memory_space<vmem>>, vector<1x16xf32>,
      %c0_43 = arith.constant 0 : index
      %c176 = arith.constant 176 : index
      %81 = vector.load %arg6[%c0_43, %c176] : memref<1x256xf32, #tpu.memory_space<vmem>>, vector<1x16xf32>
      %82 = vector.shape_cast %81 : vector<1x16xf32> to vector<16xf32>
      %c14 = arith.constant 14 : index
      %c3_44 = arith.constant 3 : index
      %83 = vector.load %arg8[%c14, %c3_44] : memref<22x44xf32, #tpu.memory_space<vmem>>, vector<1x16xf32>
      %84 = vector.shape_cast %83 : vector<1x16xf32> to vector<16xf32>
      %85 = vector.shape_cast %82 : vector<16xf32> to vector<1x16xf32>
      tpu.vector_store %arg8[%c14, %c3_44], %85 {strides = array<i32>} : memref<22x44xf32, #tpu.memory_space<vmem>>, vector<1x16xf32>,
      %c0_45 = arith.constant 0 : index
      %c192 = arith.constant 192 : index
      %86 = vector.load %arg6[%c0_45, %c192] : memref<1x256xf32, #tpu.memory_space<vmem>>, vector<1x16xf32>
      %87 = vector.shape_cast %86 : vector<1x16xf32> to vector<16xf32>
      %c15 = arith.constant 15 : index
      %c3_46 = arith.constant 3 : index
      %88 = vector.load %arg8[%c15, %c3_46] : memref<22x44xf32, #tpu.memory_space<vmem>>, vector<1x16xf32>
      %89 = vector.shape_cast %88 : vector<1x16xf32> to vector<16xf32>
      %90 = vector.shape_cast %87 : vector<16xf32> to vector<1x16xf32>
      tpu.vector_store %arg8[%c15, %c3_46], %90 {strides = array<i32>} : memref<22x44xf32, #tpu.memory_space<vmem>>, vector<1x16xf32>,
      %c0_47 = arith.constant 0 : index
      %c208 = arith.constant 208 : index
      %91 = vector.load %arg6[%c0_47, %c208] : memref<1x256xf32, #tpu.memory_space<vmem>>, vector<1x16xf32>
      %92 = vector.shape_cast %91 : vector<1x16xf32> to vector<16xf32>
      %c16_48 = arith.constant 16 : index
      %c3_49 = arith.constant 3 : index
      %93 = vector.load %arg8[%c16_48, %c3_49] : memref<22x44xf32, #tpu.memory_space<vmem>>, vector<1x16xf32>
      %94 = vector.shape_cast %93 : vector<1x16xf32> to vector<16xf32>
      %95 = vector.shape_cast %92 : vector<16xf32> to vector<1x16xf32>
      tpu.vector_store %arg8[%c16_48, %c3_49], %95 {strides = array<i32>} : memref<22x44xf32, #tpu.memory_space<vmem>>, vector<1x16xf32>,
      %c0_50 = arith.constant 0 : index
      %c224 = arith.constant 224 : index
      %96 = vector.load %arg6[%c0_50, %c224] : memref<1x256xf32, #tpu.memory_space<vmem>>, vector<1x16xf32>
      %97 = vector.shape_cast %96 : vector<1x16xf32> to vector<16xf32>
      %c17 = arith.constant 17 : index
      %c3_51 = arith.constant 3 : index
      %98 = vector.load %arg8[%c17, %c3_51] : memref<22x44xf32, #tpu.memory_space<vmem>>, vector<1x16xf32>
      %99 = vector.shape_cast %98 : vector<1x16xf32> to vector<16xf32>
      %100 = vector.shape_cast %97 : vector<16xf32> to vector<1x16xf32>
      tpu.vector_store %arg8[%c17, %c3_51], %100 {strides = array<i32>} : memref<22x44xf32, #tpu.memory_space<vmem>>, vector<1x16xf32>,
      %c0_52 = arith.constant 0 : index
      %c240 = arith.constant 240 : index
      %101 = vector.load %arg6[%c0_52, %c240] : memref<1x256xf32, #tpu.memory_space<vmem>>, vector<1x16xf32>
      %102 = vector.shape_cast %101 : vector<1x16xf32> to vector<16xf32>
      %c18 = arith.constant 18 : index
      %c3_53 = arith.constant 3 : index
      %103 = vector.load %arg8[%c18, %c3_53] : memref<22x44xf32, #tpu.memory_space<vmem>>, vector<1x16xf32>
      %104 = vector.shape_cast %103 : vector<1x16xf32> to vector<16xf32>
      %105 = vector.shape_cast %102 : vector<16xf32> to vector<1x16xf32>
      tpu.vector_store %arg8[%c18, %c3_53], %105 {strides = array<i32>} : memref<22x44xf32, #tpu.memory_space<vmem>>, vector<1x16xf32>,
      %c3_54 = arith.constant 3 : index
      %c6_55 = arith.constant 6 : index
      %106 = vector.load %arg8[%c3_54, %c6_55] : memref<22x44xf32, #tpu.memory_space<vmem>>, vector<16x1xf32>
      %c3_56 = arith.constant 3 : index
      %c0_57 = arith.constant 0 : index
      %107 = vector.load %arg8[%c3_56, %c0_57] : memref<22x44xf32, #tpu.memory_space<vmem>>, vector<16x1xf32>
      tpu.vector_store %arg8[%c3_56, %c0_57], %106 {strides = array<i32>} : memref<22x44xf32, #tpu.memory_space<vmem>>, vector<16x1xf32>,
      %c3_58 = arith.constant 3 : index
      %c5_59 = arith.constant 5 : index
      %108 = vector.load %arg8[%c3_58, %c5_59] : memref<22x44xf32, #tpu.memory_space<vmem>>, vector<16x1xf32>
      %c3_60 = arith.constant 3 : index
      %c1_61 = arith.constant 1 : index
      %109 = vector.load %arg8[%c3_60, %c1_61] : memref<22x44xf32, #tpu.memory_space<vmem>>, vector<16x1xf32>
      tpu.vector_store %arg8[%c3_60, %c1_61], %108 {strides = array<i32>} : memref<22x44xf32, #tpu.memory_space<vmem>>, vector<16x1xf32>,
      %c3_62 = arith.constant 3 : index
      %c4_63 = arith.constant 4 : index
      %110 = vector.load %arg8[%c3_62, %c4_63] : memref<22x44xf32, #tpu.memory_space<vmem>>, vector<16x1xf32>
      %c3_64 = arith.constant 3 : index
      %c2_65 = arith.constant 2 : index
      %111 = vector.load %arg8[%c3_64, %c2_65] : memref<22x44xf32, #tpu.memory_space<vmem>>, vector<16x1xf32>
      tpu.vector_store %arg8[%c3_64, %c2_65], %110 {strides = array<i32>} : memref<22x44xf32, #tpu.memory_space<vmem>>, vector<16x1xf32>,
      %c3_66 = arith.constant 3 : index
      %c17_67 = arith.constant 17 : index
      %112 = vector.load %arg8[%c3_66, %c17_67] : memref<22x44xf32, #tpu.memory_space<vmem>>, vector<16x1xf32>
      %c3_68 = arith.constant 3 : index
      %c19 = arith.constant 19 : index
      %113 = vector.load %arg8[%c3_68, %c19] : memref<22x44xf32, #tpu.memory_space<vmem>>, vector<16x1xf32>
      tpu.vector_store %arg8[%c3_68, %c19], %112 {strides = array<i32>} : memref<22x44xf32, #tpu.memory_space<vmem>>, vector<16x1xf32>,
      %c3_69 = arith.constant 3 : index
      %c16_70 = arith.constant 16 : index
      %114 = vector.load %arg8[%c3_69, %c16_70] : memref<22x44xf32, #tpu.memory_space<vmem>>, vector<16x1xf32>
      %c3_71 = arith.constant 3 : index
      %c20 = arith.constant 20 : index
      %115 = vector.load %arg8[%c3_71, %c20] : memref<22x44xf32, #tpu.memory_space<vmem>>, vector<16x1xf32>
      tpu.vector_store %arg8[%c3_71, %c20], %114 {strides = array<i32>} : memref<22x44xf32, #tpu.memory_space<vmem>>, vector<16x1xf32>,
      %c3_72 = arith.constant 3 : index
      %c15_73 = arith.constant 15 : index
      %116 = vector.load %arg8[%c3_72, %c15_73] : memref<22x44xf32, #tpu.memory_space<vmem>>, vector<16x1xf32>
      %c3_74 = arith.constant 3 : index
      %c21 = arith.constant 21 : index
      %117 = vector.load %arg8[%c3_74, %c21] : memref<22x44xf32, #tpu.memory_space<vmem>>, vector<16x1xf32>
      tpu.vector_store %arg8[%c3_74, %c21], %116 {strides = array<i32>} : memref<22x44xf32, #tpu.memory_space<vmem>>, vector<16x1xf32>,
      %c6_75 = arith.constant 6 : index
      %c0_76 = arith.constant 0 : index
      %118 = vector.load %arg8[%c6_75, %c0_76] : memref<22x44xf32, #tpu.memory_space<vmem>>, vector<1x22xf32>
      %c0_77 = arith.constant 0 : index
      %c0_78 = arith.constant 0 : index
      %119 = vector.load %arg8[%c0_77, %c0_78] : memref<22x44xf32, #tpu.memory_space<vmem>>, vector<1x22xf32>
      tpu.vector_store %arg8[%c0_77, %c0_78], %118 {strides = array<i32>} : memref<22x44xf32, #tpu.memory_space<vmem>>, vector<1x22xf32>,
      %c5_79 = arith.constant 5 : index
      %c0_80 = arith.constant 0 : index
      %120 = vector.load %arg8[%c5_79, %c0_80] : memref<22x44xf32, #tpu.memory_space<vmem>>, vector<1x22xf32>
      %c1_81 = arith.constant 1 : index
      %c0_82 = arith.constant 0 : index
      %121 = vector.load %arg8[%c1_81, %c0_82] : memref<22x44xf32, #tpu.memory_space<vmem>>, vector<1x22xf32>
      tpu.vector_store %arg8[%c1_81, %c0_82], %120 {strides = array<i32>} : memref<22x44xf32, #tpu.memory_space<vmem>>, vector<1x22xf32>,
      %c4_83 = arith.constant 4 : index
      %c0_84 = arith.constant 0 : index
      %122 = vector.load %arg8[%c4_83, %c0_84] : memref<22x44xf32, #tpu.memory_space<vmem>>, vector<1x22xf32>
      %c2_85 = arith.constant 2 : index
      %c0_86 = arith.constant 0 : index
      %123 = vector.load %arg8[%c2_85, %c0_86] : memref<22x44xf32, #tpu.memory_space<vmem>>, vector<1x22xf32>
      tpu.vector_store %arg8[%c2_85, %c0_86], %122 {strides = array<i32>} : memref<22x44xf32, #tpu.memory_space<vmem>>, vector<1x22xf32>,
      %c17_87 = arith.constant 17 : index
      %c0_88 = arith.constant 0 : index
      %124 = vector.load %arg8[%c17_87, %c0_88] : memref<22x44xf32, #tpu.memory_space<vmem>>, vector<1x22xf32>
      %c19_89 = arith.constant 19 : index
      %c0_90 = arith.constant 0 : index
      %125 = vector.load %arg8[%c19_89, %c0_90] : memref<22x44xf32, #tpu.memory_space<vmem>>, vector<1x22xf32>
      tpu.vector_store %arg8[%c19_89, %c0_90], %124 {strides = array<i32>} : memref<22x44xf32, #tpu.memory_space<vmem>>, vector<1x22xf32>,
      %c16_91 = arith.constant 16 : index
      %c0_92 = arith.constant 0 : index
      %126 = vector.load %arg8[%c16_91, %c0_92] : memref<22x44xf32, #tpu.memory_space<vmem>>, vector<1x22xf32>
      %c20_93 = arith.constant 20 : index
      %c0_94 = arith.constant 0 : index
      %127 = vector.load %arg8[%c20_93, %c0_94] : memref<22x44xf32, #tpu.memory_space<vmem>>, vector<1x22xf32>
      tpu.vector_store %arg8[%c20_93, %c0_94], %126 {strides = array<i32>} : memref<22x44xf32, #tpu.memory_space<vmem>>, vector<1x22xf32>,
      %c15_95 = arith.constant 15 : index
      %c0_96 = arith.constant 0 : index
      %128 = vector.load %arg8[%c15_95, %c0_96] : memref<22x44xf32, #tpu.memory_space<vmem>>, vector<1x22xf32>
      %c21_97 = arith.constant 21 : index
      %c0_98 = arith.constant 0 : index
      %129 = vector.load %arg8[%c21_97, %c0_98] : memref<22x44xf32, #tpu.memory_space<vmem>>, vector<1x22xf32>
      tpu.vector_store %arg8[%c21_97, %c0_98], %128 {strides = array<i32>} : memref<22x44xf32, #tpu.memory_space<vmem>>, vector<1x22xf32>,
      %c0_99 = arith.constant 0 : index
      %c0_100 = arith.constant 0 : index
      %130 = vector.load %arg7[%c0_99, %c0_100] : memref<1x256xf32, #tpu.memory_space<vmem>>, vector<1x16xf32>
      %131 = vector.shape_cast %130 : vector<1x16xf32> to vector<16xf32>
      %c3_101 = arith.constant 3 : index
      %c25 = arith.constant 25 : index
      %132 = vector.load %arg8[%c3_101, %c25] : memref<22x44xf32, #tpu.memory_space<vmem>>, vector<1x16xf32>
      %133 = vector.shape_cast %132 : vector<1x16xf32> to vector<16xf32>
      %134 = vector.shape_cast %131 : vector<16xf32> to vector<1x16xf32>
      tpu.vector_store %arg8[%c3_101, %c25], %134 {strides = array<i32>} : memref<22x44xf32, #tpu.memory_space<vmem>>, vector<1x16xf32>,
      %c0_102 = arith.constant 0 : index
      %c16_103 = arith.constant 16 : index
      %135 = vector.load %arg7[%c0_102, %c16_103] : memref<1x256xf32, #tpu.memory_space<vmem>>, vector<1x16xf32>
      %136 = vector.shape_cast %135 : vector<1x16xf32> to vector<16xf32>
      %c4_104 = arith.constant 4 : index
      %c25_105 = arith.constant 25 : index
      %137 = vector.load %arg8[%c4_104, %c25_105] : memref<22x44xf32, #tpu.memory_space<vmem>>, vector<1x16xf32>
      %138 = vector.shape_cast %137 : vector<1x16xf32> to vector<16xf32>
      %139 = vector.shape_cast %136 : vector<16xf32> to vector<1x16xf32>
      tpu.vector_store %arg8[%c4_104, %c25_105], %139 {strides = array<i32>} : memref<22x44xf32, #tpu.memory_space<vmem>>, vector<1x16xf32>,
      %c0_106 = arith.constant 0 : index
      %c32_107 = arith.constant 32 : index
      %140 = vector.load %arg7[%c0_106, %c32_107] : memref<1x256xf32, #tpu.memory_space<vmem>>, vector<1x16xf32>
      %141 = vector.shape_cast %140 : vector<1x16xf32> to vector<16xf32>
      %c5_108 = arith.constant 5 : index
      %c25_109 = arith.constant 25 : index
      %142 = vector.load %arg8[%c5_108, %c25_109] : memref<22x44xf32, #tpu.memory_space<vmem>>, vector<1x16xf32>
      %143 = vector.shape_cast %142 : vector<1x16xf32> to vector<16xf32>
      %144 = vector.shape_cast %141 : vector<16xf32> to vector<1x16xf32>
      tpu.vector_store %arg8[%c5_108, %c25_109], %144 {strides = array<i32>} : memref<22x44xf32, #tpu.memory_space<vmem>>, vector<1x16xf32>,
      %c0_110 = arith.constant 0 : index
      %c48_111 = arith.constant 48 : index
      %145 = vector.load %arg7[%c0_110, %c48_111] : memref<1x256xf32, #tpu.memory_space<vmem>>, vector<1x16xf32>
      %146 = vector.shape_cast %145 : vector<1x16xf32> to vector<16xf32>
      %c6_112 = arith.constant 6 : index
      %c25_113 = arith.constant 25 : index
      %147 = vector.load %arg8[%c6_112, %c25_113] : memref<22x44xf32, #tpu.memory_space<vmem>>, vector<1x16xf32>
      %148 = vector.shape_cast %147 : vector<1x16xf32> to vector<16xf32>
      %149 = vector.shape_cast %146 : vector<16xf32> to vector<1x16xf32>
      tpu.vector_store %arg8[%c6_112, %c25_113], %149 {strides = array<i32>} : memref<22x44xf32, #tpu.memory_space<vmem>>, vector<1x16xf32>,
      %c0_114 = arith.constant 0 : index
      %c64_115 = arith.constant 64 : index
      %150 = vector.load %arg7[%c0_114, %c64_115] : memref<1x256xf32, #tpu.memory_space<vmem>>, vector<1x16xf32>
      %151 = vector.shape_cast %150 : vector<1x16xf32> to vector<16xf32>
      %c7_116 = arith.constant 7 : index
      %c25_117 = arith.constant 25 : index
      %152 = vector.load %arg8[%c7_116, %c25_117] : memref<22x44xf32, #tpu.memory_space<vmem>>, vector<1x16xf32>
      %153 = vector.shape_cast %152 : vector<1x16xf32> to vector<16xf32>
      %154 = vector.shape_cast %151 : vector<16xf32> to vector<1x16xf32>
      tpu.vector_store %arg8[%c7_116, %c25_117], %154 {strides = array<i32>} : memref<22x44xf32, #tpu.memory_space<vmem>>, vector<1x16xf32>,
      %c0_118 = arith.constant 0 : index
      %c80_119 = arith.constant 80 : index
      %155 = vector.load %arg7[%c0_118, %c80_119] : memref<1x256xf32, #tpu.memory_space<vmem>>, vector<1x16xf32>
      %156 = vector.shape_cast %155 : vector<1x16xf32> to vector<16xf32>
      %c8_120 = arith.constant 8 : index
      %c25_121 = arith.constant 25 : index
      %157 = vector.load %arg8[%c8_120, %c25_121] : memref<22x44xf32, #tpu.memory_space<vmem>>, vector<1x16xf32>
      %158 = vector.shape_cast %157 : vector<1x16xf32> to vector<16xf32>
      %159 = vector.shape_cast %156 : vector<16xf32> to vector<1x16xf32>
      tpu.vector_store %arg8[%c8_120, %c25_121], %159 {strides = array<i32>} : memref<22x44xf32, #tpu.memory_space<vmem>>, vector<1x16xf32>,
      %c0_122 = arith.constant 0 : index
      %c96_123 = arith.constant 96 : index
      %160 = vector.load %arg7[%c0_122, %c96_123] : memref<1x256xf32, #tpu.memory_space<vmem>>, vector<1x16xf32>
      %161 = vector.shape_cast %160 : vector<1x16xf32> to vector<16xf32>
      %c9_124 = arith.constant 9 : index
      %c25_125 = arith.constant 25 : index
      %162 = vector.load %arg8[%c9_124, %c25_125] : memref<22x44xf32, #tpu.memory_space<vmem>>, vector<1x16xf32>
      %163 = vector.shape_cast %162 : vector<1x16xf32> to vector<16xf32>
      %164 = vector.shape_cast %161 : vector<16xf32> to vector<1x16xf32>
      tpu.vector_store %arg8[%c9_124, %c25_125], %164 {strides = array<i32>} : memref<22x44xf32, #tpu.memory_space<vmem>>, vector<1x16xf32>,
      %c0_126 = arith.constant 0 : index
      %c112_127 = arith.constant 112 : index
      %165 = vector.load %arg7[%c0_126, %c112_127] : memref<1x256xf32, #tpu.memory_space<vmem>>, vector<1x16xf32>
      %166 = vector.shape_cast %165 : vector<1x16xf32> to vector<16xf32>
      %c10_128 = arith.constant 10 : index
      %c25_129 = arith.constant 25 : index
      %167 = vector.load %arg8[%c10_128, %c25_129] : memref<22x44xf32, #tpu.memory_space<vmem>>, vector<1x16xf32>
      %168 = vector.shape_cast %167 : vector<1x16xf32> to vector<16xf32>
      %169 = vector.shape_cast %166 : vector<16xf32> to vector<1x16xf32>
      tpu.vector_store %arg8[%c10_128, %c25_129], %169 {strides = array<i32>} : memref<22x44xf32, #tpu.memory_space<vmem>>, vector<1x16xf32>,
      %c0_130 = arith.constant 0 : index
      %c128_131 = arith.constant 128 : index
      %170 = vector.load %arg7[%c0_130, %c128_131] : memref<1x256xf32, #tpu.memory_space<vmem>>, vector<1x16xf32>
      %171 = vector.shape_cast %170 : vector<1x16xf32> to vector<16xf32>
      %c11_132 = arith.constant 11 : index
      %c25_133 = arith.constant 25 : index
      %172 = vector.load %arg8[%c11_132, %c25_133] : memref<22x44xf32, #tpu.memory_space<vmem>>, vector<1x16xf32>
      %173 = vector.shape_cast %172 : vector<1x16xf32> to vector<16xf32>
      %174 = vector.shape_cast %171 : vector<16xf32> to vector<1x16xf32>
      tpu.vector_store %arg8[%c11_132, %c25_133], %174 {strides = array<i32>} : memref<22x44xf32, #tpu.memory_space<vmem>>, vector<1x16xf32>,
      %c0_134 = arith.constant 0 : index
      %c144_135 = arith.constant 144 : index
      %175 = vector.load %arg7[%c0_134, %c144_135] : memref<1x256xf32, #tpu.memory_space<vmem>>, vector<1x16xf32>
      %176 = vector.shape_cast %175 : vector<1x16xf32> to vector<16xf32>
      %c12_136 = arith.constant 12 : index
      %c25_137 = arith.constant 25 : index
      %177 = vector.load %arg8[%c12_136, %c25_137] : memref<22x44xf32, #tpu.memory_space<vmem>>, vector<1x16xf32>
      %178 = vector.shape_cast %177 : vector<1x16xf32> to vector<16xf32>
      %179 = vector.shape_cast %176 : vector<16xf32> to vector<1x16xf32>
      tpu.vector_store %arg8[%c12_136, %c25_137], %179 {strides = array<i32>} : memref<22x44xf32, #tpu.memory_space<vmem>>, vector<1x16xf32>,
      %c0_138 = arith.constant 0 : index
      %c160_139 = arith.constant 160 : index
      %180 = vector.load %arg7[%c0_138, %c160_139] : memref<1x256xf32, #tpu.memory_space<vmem>>, vector<1x16xf32>
      %181 = vector.shape_cast %180 : vector<1x16xf32> to vector<16xf32>
      %c13_140 = arith.constant 13 : index
      %c25_141 = arith.constant 25 : index
      %182 = vector.load %arg8[%c13_140, %c25_141] : memref<22x44xf32, #tpu.memory_space<vmem>>, vector<1x16xf32>
      %183 = vector.shape_cast %182 : vector<1x16xf32> to vector<16xf32>
      %184 = vector.shape_cast %181 : vector<16xf32> to vector<1x16xf32>
      tpu.vector_store %arg8[%c13_140, %c25_141], %184 {strides = array<i32>} : memref<22x44xf32, #tpu.memory_space<vmem>>, vector<1x16xf32>,
      %c0_142 = arith.constant 0 : index
      %c176_143 = arith.constant 176 : index
      %185 = vector.load %arg7[%c0_142, %c176_143] : memref<1x256xf32, #tpu.memory_space<vmem>>, vector<1x16xf32>
      %186 = vector.shape_cast %185 : vector<1x16xf32> to vector<16xf32>
      %c14_144 = arith.constant 14 : index
      %c25_145 = arith.constant 25 : index
      %187 = vector.load %arg8[%c14_144, %c25_145] : memref<22x44xf32, #tpu.memory_space<vmem>>, vector<1x16xf32>
      %188 = vector.shape_cast %187 : vector<1x16xf32> to vector<16xf32>
      %189 = vector.shape_cast %186 : vector<16xf32> to vector<1x16xf32>
      tpu.vector_store %arg8[%c14_144, %c25_145], %189 {strides = array<i32>} : memref<22x44xf32, #tpu.memory_space<vmem>>, vector<1x16xf32>,
      %c0_146 = arith.constant 0 : index
      %c192_147 = arith.constant 192 : index
      %190 = vector.load %arg7[%c0_146, %c192_147] : memref<1x256xf32, #tpu.memory_space<vmem>>, vector<1x16xf32>
      %191 = vector.shape_cast %190 : vector<1x16xf32> to vector<16xf32>
      %c15_148 = arith.constant 15 : index
      %c25_149 = arith.constant 25 : index
      %192 = vector.load %arg8[%c15_148, %c25_149] : memref<22x44xf32, #tpu.memory_space<vmem>>, vector<1x16xf32>
      %193 = vector.shape_cast %192 : vector<1x16xf32> to vector<16xf32>
      %194 = vector.shape_cast %191 : vector<16xf32> to vector<1x16xf32>
      tpu.vector_store %arg8[%c15_148, %c25_149], %194 {strides = array<i32>} : memref<22x44xf32, #tpu.memory_space<vmem>>, vector<1x16xf32>,
      %c0_150 = arith.constant 0 : index
      %c208_151 = arith.constant 208 : index
      %195 = vector.load %arg7[%c0_150, %c208_151] : memref<1x256xf32, #tpu.memory_space<vmem>>, vector<1x16xf32>
      %196 = vector.shape_cast %195 : vector<1x16xf32> to vector<16xf32>
      %c16_152 = arith.constant 16 : index
      %c25_153 = arith.constant 25 : index
      %197 = vector.load %arg8[%c16_152, %c25_153] : memref<22x44xf32, #tpu.memory_space<vmem>>, vector<1x16xf32>
      %198 = vector.shape_cast %197 : vector<1x16xf32> to vector<16xf32>
      %199 = vector.shape_cast %196 : vector<16xf32> to vector<1x16xf32>
      tpu.vector_store %arg8[%c16_152, %c25_153], %199 {strides = array<i32>} : memref<22x44xf32, #tpu.memory_space<vmem>>, vector<1x16xf32>,
      %c0_154 = arith.constant 0 : index
      %c224_155 = arith.constant 224 : index
      %200 = vector.load %arg7[%c0_154, %c224_155] : memref<1x256xf32, #tpu.memory_space<vmem>>, vector<1x16xf32>
      %201 = vector.shape_cast %200 : vector<1x16xf32> to vector<16xf32>
      %c17_156 = arith.constant 17 : index
      %c25_157 = arith.constant 25 : index
      %202 = vector.load %arg8[%c17_156, %c25_157] : memref<22x44xf32, #tpu.memory_space<vmem>>, vector<1x16xf32>
      %203 = vector.shape_cast %202 : vector<1x16xf32> to vector<16xf32>
      %204 = vector.shape_cast %201 : vector<16xf32> to vector<1x16xf32>
      tpu.vector_store %arg8[%c17_156, %c25_157], %204 {strides = array<i32>} : memref<22x44xf32, #tpu.memory_space<vmem>>, vector<1x16xf32>,
      %c0_158 = arith.constant 0 : index
      %c240_159 = arith.constant 240 : index
      %205 = vector.load %arg7[%c0_158, %c240_159] : memref<1x256xf32, #tpu.memory_space<vmem>>, vector<1x16xf32>
      %206 = vector.shape_cast %205 : vector<1x16xf32> to vector<16xf32>
      %c18_160 = arith.constant 18 : index
      %c25_161 = arith.constant 25 : index
      %207 = vector.load %arg8[%c18_160, %c25_161] : memref<22x44xf32, #tpu.memory_space<vmem>>, vector<1x16xf32>
      %208 = vector.shape_cast %207 : vector<1x16xf32> to vector<16xf32>
      %209 = vector.shape_cast %206 : vector<16xf32> to vector<1x16xf32>
      tpu.vector_store %arg8[%c18_160, %c25_161], %209 {strides = array<i32>} : memref<22x44xf32, #tpu.memory_space<vmem>>, vector<1x16xf32>,
      %c3_162 = arith.constant 3 : index
      %c28 = arith.constant 28 : index
      %210 = vector.load %arg8[%c3_162, %c28] : memref<22x44xf32, #tpu.memory_space<vmem>>, vector<16x1xf32>
      %c3_163 = arith.constant 3 : index
      %c22 = arith.constant 22 : index
      %211 = vector.load %arg8[%c3_163, %c22] : memref<22x44xf32, #tpu.memory_space<vmem>>, vector<16x1xf32>
      tpu.vector_store %arg8[%c3_163, %c22], %210 {strides = array<i32>} : memref<22x44xf32, #tpu.memory_space<vmem>>, vector<16x1xf32>,
      %c3_164 = arith.constant 3 : index
      %c27 = arith.constant 27 : index
      %212 = vector.load %arg8[%c3_164, %c27] : memref<22x44xf32, #tpu.memory_space<vmem>>, vector<16x1xf32>
      %c3_165 = arith.constant 3 : index
      %c23 = arith.constant 23 : index
      %213 = vector.load %arg8[%c3_165, %c23] : memref<22x44xf32, #tpu.memory_space<vmem>>, vector<16x1xf32>
      tpu.vector_store %arg8[%c3_165, %c23], %212 {strides = array<i32>} : memref<22x44xf32, #tpu.memory_space<vmem>>, vector<16x1xf32>,
      %c3_166 = arith.constant 3 : index
      %c26 = arith.constant 26 : index
      %214 = vector.load %arg8[%c3_166, %c26] : memref<22x44xf32, #tpu.memory_space<vmem>>, vector<16x1xf32>
      %c3_167 = arith.constant 3 : index
      %c24 = arith.constant 24 : index
      %215 = vector.load %arg8[%c3_167, %c24] : memref<22x44xf32, #tpu.memory_space<vmem>>, vector<16x1xf32>
      tpu.vector_store %arg8[%c3_167, %c24], %214 {strides = array<i32>} : memref<22x44xf32, #tpu.memory_space<vmem>>, vector<16x1xf32>,
      %c3_168 = arith.constant 3 : index
      %c39 = arith.constant 39 : index
      %216 = vector.load %arg8[%c3_168, %c39] : memref<22x44xf32, #tpu.memory_space<vmem>>, vector<16x1xf32>
      %c3_169 = arith.constant 3 : index
      %c41 = arith.constant 41 : index
      %217 = vector.load %arg8[%c3_169, %c41] : memref<22x44xf32, #tpu.memory_space<vmem>>, vector<16x1xf32>
      tpu.vector_store %arg8[%c3_169, %c41], %216 {strides = array<i32>} : memref<22x44xf32, #tpu.memory_space<vmem>>, vector<16x1xf32>,
      %c3_170 = arith.constant 3 : index
      %c38 = arith.constant 38 : index
      %218 = vector.load %arg8[%c3_170, %c38] : memref<22x44xf32, #tpu.memory_space<vmem>>, vector<16x1xf32>
      %c3_171 = arith.constant 3 : index
      %c42 = arith.constant 42 : index
      %219 = vector.load %arg8[%c3_171, %c42] : memref<22x44xf32, #tpu.memory_space<vmem>>, vector<16x1xf32>
      tpu.vector_store %arg8[%c3_171, %c42], %218 {strides = array<i32>} : memref<22x44xf32, #tpu.memory_space<vmem>>, vector<16x1xf32>,
      %c3_172 = arith.constant 3 : index
      %c37 = arith.constant 37 : index
      %220 = vector.load %arg8[%c3_172, %c37] : memref<22x44xf32, #tpu.memory_space<vmem>>, vector<16x1xf32>
      %c3_173 = arith.constant 3 : index
      %c43 = arith.constant 43 : index
      %221 = vector.load %arg8[%c3_173, %c43] : memref<22x44xf32, #tpu.memory_space<vmem>>, vector<16x1xf32>
      tpu.vector_store %arg8[%c3_173, %c43], %220 {strides = array<i32>} : memref<22x44xf32, #tpu.memory_space<vmem>>, vector<16x1xf32>,
      %c6_174 = arith.constant 6 : index
      %c22_175 = arith.constant 22 : index
      %222 = vector.load %arg8[%c6_174, %c22_175] : memref<22x44xf32, #tpu.memory_space<vmem>>, vector<1x22xf32>
      %c0_176 = arith.constant 0 : index
      %c22_177 = arith.constant 22 : index
      %223 = vector.load %arg8[%c0_176, %c22_177] : memref<22x44xf32, #tpu.memory_space<vmem>>, vector<1x22xf32>
      tpu.vector_store %arg8[%c0_176, %c22_177], %222 {strides = array<i32>} : memref<22x44xf32, #tpu.memory_space<vmem>>, vector<1x22xf32>,
      %c5_178 = arith.constant 5 : index
      %c22_179 = arith.constant 22 : index
      %224 = vector.load %arg8[%c5_178, %c22_179] : memref<22x44xf32, #tpu.memory_space<vmem>>, vector<1x22xf32>
      %c1_180 = arith.constant 1 : index
      %c22_181 = arith.constant 22 : index
      %225 = vector.load %arg8[%c1_180, %c22_181] : memref<22x44xf32, #tpu.memory_space<vmem>>, vector<1x22xf32>
      tpu.vector_store %arg8[%c1_180, %c22_181], %224 {strides = array<i32>} : memref<22x44xf32, #tpu.memory_space<vmem>>, vector<1x22xf32>,
      %c4_182 = arith.constant 4 : index
      %c22_183 = arith.constant 22 : index
      %226 = vector.load %arg8[%c4_182, %c22_183] : memref<22x44xf32, #tpu.memory_space<vmem>>, vector<1x22xf32>
      %c2_184 = arith.constant 2 : index
      %c22_185 = arith.constant 22 : index
      %227 = vector.load %arg8[%c2_184, %c22_185] : memref<22x44xf32, #tpu.memory_space<vmem>>, vector<1x22xf32>
      tpu.vector_store %arg8[%c2_184, %c22_185], %226 {strides = array<i32>} : memref<22x44xf32, #tpu.memory_space<vmem>>, vector<1x22xf32>,
      %c17_186 = arith.constant 17 : index
      %c22_187 = arith.constant 22 : index
      %228 = vector.load %arg8[%c17_186, %c22_187] : memref<22x44xf32, #tpu.memory_space<vmem>>, vector<1x22xf32>
      %c19_188 = arith.constant 19 : index
      %c22_189 = arith.constant 22 : index
      %229 = vector.load %arg8[%c19_188, %c22_189] : memref<22x44xf32, #tpu.memory_space<vmem>>, vector<1x22xf32>
      tpu.vector_store %arg8[%c19_188, %c22_189], %228 {strides = array<i32>} : memref<22x44xf32, #tpu.memory_space<vmem>>, vector<1x22xf32>,
      %c16_190 = arith.constant 16 : index
      %c22_191 = arith.constant 22 : index
      %230 = vector.load %arg8[%c16_190, %c22_191] : memref<22x44xf32, #tpu.memory_space<vmem>>, vector<1x22xf32>
      %c20_192 = arith.constant 20 : index
      %c22_193 = arith.constant 22 : index
      %231 = vector.load %arg8[%c20_192, %c22_193] : memref<22x44xf32, #tpu.memory_space<vmem>>, vector<1x22xf32>
      tpu.vector_store %arg8[%c20_192, %c22_193], %230 {strides = array<i32>} : memref<22x44xf32, #tpu.memory_space<vmem>>, vector<1x22xf32>,
      %c15_194 = arith.constant 15 : index
      %c22_195 = arith.constant 22 : index
      %232 = vector.load %arg8[%c15_194, %c22_195] : memref<22x44xf32, #tpu.memory_space<vmem>>, vector<1x22xf32>
      %c21_196 = arith.constant 21 : index
      %c22_197 = arith.constant 22 : index
      %233 = vector.load %arg8[%c21_196, %c22_197] : memref<22x44xf32, #tpu.memory_space<vmem>>, vector<1x22xf32>
      tpu.vector_store %arg8[%c21_196, %c22_197], %232 {strides = array<i32>} : memref<22x44xf32, #tpu.memory_space<vmem>>, vector<1x22xf32>,
      %cst = arith.constant 0.000000e+00 : f32
      %234 = vector.broadcast %cst : f32 to vector<16x38xf32>
      %c0_198 = arith.constant 0 : index
      %c0_199 = arith.constant 0 : index
      %235 = vector.load %arg8[%c0_198, %c0_199] : memref<22x44xf32, #tpu.memory_space<vmem>>, vector<22x38xf32>
      %c0_200 = arith.constant 0 : index
      %c0_201 = arith.constant 0 : index
      %236 = vector.load %arg3[%c0_200, %c0_201] : memref<49x38xf32, #tpu.memory_space<vmem>>, vector<1x38xf32>
      %237 = vector.shape_cast %236 : vector<1x38xf32> to vector<38xf32>
      %238 = vector.extract_strided_slice %235 {offsets = [0, 0], sizes = [16, 38], strides = [1, 1]} : vector<22x38xf32> to vector<16x38xf32>
      %239 = vector.shape_cast %237 : vector<38xf32> to vector<1x38xf32>
      %240 = vector.broadcast %239 : vector<1x38xf32> to vector<16x38xf32>
      %241 = arith.mulf %240, %238 : vector<16x38xf32>
      %242 = arith.addf %234, %241 : vector<16x38xf32>
      %c7_202 = arith.constant 7 : index
      %c0_203 = arith.constant 0 : index
      %243 = vector.load %arg3[%c7_202, %c0_203] : memref<49x38xf32, #tpu.memory_space<vmem>>, vector<1x38xf32>
      %244 = vector.shape_cast %243 : vector<1x38xf32> to vector<38xf32>
      %245 = vector.extract_strided_slice %235 {offsets = [1, 0], sizes = [16, 38], strides = [1, 1]} : vector<22x38xf32> to vector<16x38xf32>
      %246 = vector.shape_cast %244 : vector<38xf32> to vector<1x38xf32>
      %247 = vector.broadcast %246 : vector<1x38xf32> to vector<16x38xf32>
      %248 = arith.mulf %247, %245 : vector<16x38xf32>
      %249 = arith.addf %242, %248 : vector<16x38xf32>
      %c14_204 = arith.constant 14 : index
      %c0_205 = arith.constant 0 : index
      %250 = vector.load %arg3[%c14_204, %c0_205] : memref<49x38xf32, #tpu.memory_space<vmem>>, vector<1x38xf32>
      %251 = vector.shape_cast %250 : vector<1x38xf32> to vector<38xf32>
      %252 = vector.extract_strided_slice %235 {offsets = [2, 0], sizes = [16, 38], strides = [1, 1]} : vector<22x38xf32> to vector<16x38xf32>
      %253 = vector.shape_cast %251 : vector<38xf32> to vector<1x38xf32>
      %254 = vector.broadcast %253 : vector<1x38xf32> to vector<16x38xf32>
      %255 = arith.mulf %254, %252 : vector<16x38xf32>
      %256 = arith.addf %249, %255 : vector<16x38xf32>
      %c21_206 = arith.constant 21 : index
      %c0_207 = arith.constant 0 : index
      %257 = vector.load %arg3[%c21_206, %c0_207] : memref<49x38xf32, #tpu.memory_space<vmem>>, vector<1x38xf32>
      %258 = vector.shape_cast %257 : vector<1x38xf32> to vector<38xf32>
      %259 = vector.extract_strided_slice %235 {offsets = [3, 0], sizes = [16, 38], strides = [1, 1]} : vector<22x38xf32> to vector<16x38xf32>
      %260 = vector.shape_cast %258 : vector<38xf32> to vector<1x38xf32>
      %261 = vector.broadcast %260 : vector<1x38xf32> to vector<16x38xf32>
      %262 = arith.mulf %261, %259 : vector<16x38xf32>
      %263 = arith.addf %256, %262 : vector<16x38xf32>
      %c28_208 = arith.constant 28 : index
      %c0_209 = arith.constant 0 : index
      %264 = vector.load %arg3[%c28_208, %c0_209] : memref<49x38xf32, #tpu.memory_space<vmem>>, vector<1x38xf32>
      %265 = vector.shape_cast %264 : vector<1x38xf32> to vector<38xf32>
      %266 = vector.extract_strided_slice %235 {offsets = [4, 0], sizes = [16, 38], strides = [1, 1]} : vector<22x38xf32> to vector<16x38xf32>
      %267 = vector.shape_cast %265 : vector<38xf32> to vector<1x38xf32>
      %268 = vector.broadcast %267 : vector<1x38xf32> to vector<16x38xf32>
      %269 = arith.mulf %268, %266 : vector<16x38xf32>
      %270 = arith.addf %263, %269 : vector<16x38xf32>
      %c35 = arith.constant 35 : index
      %c0_210 = arith.constant 0 : index
      %271 = vector.load %arg3[%c35, %c0_210] : memref<49x38xf32, #tpu.memory_space<vmem>>, vector<1x38xf32>
      %272 = vector.shape_cast %271 : vector<1x38xf32> to vector<38xf32>
      %273 = vector.extract_strided_slice %235 {offsets = [5, 0], sizes = [16, 38], strides = [1, 1]} : vector<22x38xf32> to vector<16x38xf32>
      %274 = vector.shape_cast %272 : vector<38xf32> to vector<1x38xf32>
      %275 = vector.broadcast %274 : vector<1x38xf32> to vector<16x38xf32>
      %276 = arith.mulf %275, %273 : vector<16x38xf32>
      %277 = arith.addf %270, %276 : vector<16x38xf32>
      %c42_211 = arith.constant 42 : index
      %c0_212 = arith.constant 0 : index
      %278 = vector.load %arg3[%c42_211, %c0_212] : memref<49x38xf32, #tpu.memory_space<vmem>>, vector<1x38xf32>
      %279 = vector.shape_cast %278 : vector<1x38xf32> to vector<38xf32>
      %280 = vector.extract_strided_slice %235 {offsets = [6, 0], sizes = [16, 38], strides = [1, 1]} : vector<22x38xf32> to vector<16x38xf32>
      %281 = vector.shape_cast %279 : vector<38xf32> to vector<1x38xf32>
      %282 = vector.broadcast %281 : vector<1x38xf32> to vector<16x38xf32>
      %283 = arith.mulf %282, %280 : vector<16x38xf32>
      %284 = arith.addf %277, %283 : vector<16x38xf32>
      %c0_213 = arith.constant 0 : index
      %c1_214 = arith.constant 1 : index
      %285 = vector.load %arg8[%c0_213, %c1_214] : memref<22x44xf32, #tpu.memory_space<vmem>>, vector<22x38xf32>
      %c1_215 = arith.constant 1 : index
      %c0_216 = arith.constant 0 : index
      %286 = vector.load %arg3[%c1_215, %c0_216] : memref<49x38xf32, #tpu.memory_space<vmem>>, vector<1x38xf32>
      %287 = vector.shape_cast %286 : vector<1x38xf32> to vector<38xf32>
      %288 = vector.extract_strided_slice %285 {offsets = [0, 0], sizes = [16, 38], strides = [1, 1]} : vector<22x38xf32> to vector<16x38xf32>
      %289 = vector.shape_cast %287 : vector<38xf32> to vector<1x38xf32>
      %290 = vector.broadcast %289 : vector<1x38xf32> to vector<16x38xf32>
      %291 = arith.mulf %290, %288 : vector<16x38xf32>
      %292 = arith.addf %284, %291 : vector<16x38xf32>
      %c8_217 = arith.constant 8 : index
      %c0_218 = arith.constant 0 : index
      %293 = vector.load %arg3[%c8_217, %c0_218] : memref<49x38xf32, #tpu.memory_space<vmem>>, vector<1x38xf32>
      %294 = vector.shape_cast %293 : vector<1x38xf32> to vector<38xf32>
      %295 = vector.extract_strided_slice %285 {offsets = [1, 0], sizes = [16, 38], strides = [1, 1]} : vector<22x38xf32> to vector<16x38xf32>
      %296 = vector.shape_cast %294 : vector<38xf32> to vector<1x38xf32>
      %297 = vector.broadcast %296 : vector<1x38xf32> to vector<16x38xf32>
      %298 = arith.mulf %297, %295 : vector<16x38xf32>
      %299 = arith.addf %292, %298 : vector<16x38xf32>
      %c15_219 = arith.constant 15 : index
      %c0_220 = arith.constant 0 : index
      %300 = vector.load %arg3[%c15_219, %c0_220] : memref<49x38xf32, #tpu.memory_space<vmem>>, vector<1x38xf32>
      %301 = vector.shape_cast %300 : vector<1x38xf32> to vector<38xf32>
      %302 = vector.extract_strided_slice %285 {offsets = [2, 0], sizes = [16, 38], strides = [1, 1]} : vector<22x38xf32> to vector<16x38xf32>
      %303 = vector.shape_cast %301 : vector<38xf32> to vector<1x38xf32>
      %304 = vector.broadcast %303 : vector<1x38xf32> to vector<16x38xf32>
      %305 = arith.mulf %304, %302 : vector<16x38xf32>
      %306 = arith.addf %299, %305 : vector<16x38xf32>
      %c22_221 = arith.constant 22 : index
      %c0_222 = arith.constant 0 : index
      %307 = vector.load %arg3[%c22_221, %c0_222] : memref<49x38xf32, #tpu.memory_space<vmem>>, vector<1x38xf32>
      %308 = vector.shape_cast %307 : vector<1x38xf32> to vector<38xf32>
      %309 = vector.extract_strided_slice %285 {offsets = [3, 0], sizes = [16, 38], strides = [1, 1]} : vector<22x38xf32> to vector<16x38xf32>
      %310 = vector.shape_cast %308 : vector<38xf32> to vector<1x38xf32>
      %311 = vector.broadcast %310 : vector<1x38xf32> to vector<16x38xf32>
      %312 = arith.mulf %311, %309 : vector<16x38xf32>
      %313 = arith.addf %306, %312 : vector<16x38xf32>
      %c29 = arith.constant 29 : index
      %c0_223 = arith.constant 0 : index
      %314 = vector.load %arg3[%c29, %c0_223] : memref<49x38xf32, #tpu.memory_space<vmem>>, vector<1x38xf32>
      %315 = vector.shape_cast %314 : vector<1x38xf32> to vector<38xf32>
      %316 = vector.extract_strided_slice %285 {offsets = [4, 0], sizes = [16, 38], strides = [1, 1]} : vector<22x38xf32> to vector<16x38xf32>
      %317 = vector.shape_cast %315 : vector<38xf32> to vector<1x38xf32>
      %318 = vector.broadcast %317 : vector<1x38xf32> to vector<16x38xf32>
      %319 = arith.mulf %318, %316 : vector<16x38xf32>
      %320 = arith.addf %313, %319 : vector<16x38xf32>
      %c36 = arith.constant 36 : index
      %c0_224 = arith.constant 0 : index
      %321 = vector.load %arg3[%c36, %c0_224] : memref<49x38xf32, #tpu.memory_space<vmem>>, vector<1x38xf32>
      %322 = vector.shape_cast %321 : vector<1x38xf32> to vector<38xf32>
      %323 = vector.extract_strided_slice %285 {offsets = [5, 0], sizes = [16, 38], strides = [1, 1]} : vector<22x38xf32> to vector<16x38xf32>
      %324 = vector.shape_cast %322 : vector<38xf32> to vector<1x38xf32>
      %325 = vector.broadcast %324 : vector<1x38xf32> to vector<16x38xf32>
      %326 = arith.mulf %325, %323 : vector<16x38xf32>
      %327 = arith.addf %320, %326 : vector<16x38xf32>
      %c43_225 = arith.constant 43 : index
      %c0_226 = arith.constant 0 : index
      %328 = vector.load %arg3[%c43_225, %c0_226] : memref<49x38xf32, #tpu.memory_space<vmem>>, vector<1x38xf32>
      %329 = vector.shape_cast %328 : vector<1x38xf32> to vector<38xf32>
      %330 = vector.extract_strided_slice %285 {offsets = [6, 0], sizes = [16, 38], strides = [1, 1]} : vector<22x38xf32> to vector<16x38xf32>
      %331 = vector.shape_cast %329 : vector<38xf32> to vector<1x38xf32>
      %332 = vector.broadcast %331 : vector<1x38xf32> to vector<16x38xf32>
      %333 = arith.mulf %332, %330 : vector<16x38xf32>
      %334 = arith.addf %327, %333 : vector<16x38xf32>
      %c0_227 = arith.constant 0 : index
      %c2_228 = arith.constant 2 : index
      %335 = vector.load %arg8[%c0_227, %c2_228] : memref<22x44xf32, #tpu.memory_space<vmem>>, vector<22x38xf32>
      %c2_229 = arith.constant 2 : index
      %c0_230 = arith.constant 0 : index
      %336 = vector.load %arg3[%c2_229, %c0_230] : memref<49x38xf32, #tpu.memory_space<vmem>>, vector<1x38xf32>
      %337 = vector.shape_cast %336 : vector<1x38xf32> to vector<38xf32>
      %338 = vector.extract_strided_slice %335 {offsets = [0, 0], sizes = [16, 38], strides = [1, 1]} : vector<22x38xf32> to vector<16x38xf32>
      %339 = vector.shape_cast %337 : vector<38xf32> to vector<1x38xf32>
      %340 = vector.broadcast %339 : vector<1x38xf32> to vector<16x38xf32>
      %341 = arith.mulf %340, %338 : vector<16x38xf32>
      %342 = arith.addf %334, %341 : vector<16x38xf32>
      %c9_231 = arith.constant 9 : index
      %c0_232 = arith.constant 0 : index
      %343 = vector.load %arg3[%c9_231, %c0_232] : memref<49x38xf32, #tpu.memory_space<vmem>>, vector<1x38xf32>
      %344 = vector.shape_cast %343 : vector<1x38xf32> to vector<38xf32>
      %345 = vector.extract_strided_slice %335 {offsets = [1, 0], sizes = [16, 38], strides = [1, 1]} : vector<22x38xf32> to vector<16x38xf32>
      %346 = vector.shape_cast %344 : vector<38xf32> to vector<1x38xf32>
      %347 = vector.broadcast %346 : vector<1x38xf32> to vector<16x38xf32>
      %348 = arith.mulf %347, %345 : vector<16x38xf32>
      %349 = arith.addf %342, %348 : vector<16x38xf32>
      %c16_233 = arith.constant 16 : index
      %c0_234 = arith.constant 0 : index
      %350 = vector.load %arg3[%c16_233, %c0_234] : memref<49x38xf32, #tpu.memory_space<vmem>>, vector<1x38xf32>
      %351 = vector.shape_cast %350 : vector<1x38xf32> to vector<38xf32>
      %352 = vector.extract_strided_slice %335 {offsets = [2, 0], sizes = [16, 38], strides = [1, 1]} : vector<22x38xf32> to vector<16x38xf32>
      %353 = vector.shape_cast %351 : vector<38xf32> to vector<1x38xf32>
      %354 = vector.broadcast %353 : vector<1x38xf32> to vector<16x38xf32>
      %355 = arith.mulf %354, %352 : vector<16x38xf32>
      %356 = arith.addf %349, %355 : vector<16x38xf32>
      %c23_235 = arith.constant 23 : index
      %c0_236 = arith.constant 0 : index
      %357 = vector.load %arg3[%c23_235, %c0_236] : memref<49x38xf32, #tpu.memory_space<vmem>>, vector<1x38xf32>
      %358 = vector.shape_cast %357 : vector<1x38xf32> to vector<38xf32>
      %359 = vector.extract_strided_slice %335 {offsets = [3, 0], sizes = [16, 38], strides = [1, 1]} : vector<22x38xf32> to vector<16x38xf32>
      %360 = vector.shape_cast %358 : vector<38xf32> to vector<1x38xf32>
      %361 = vector.broadcast %360 : vector<1x38xf32> to vector<16x38xf32>
      %362 = arith.mulf %361, %359 : vector<16x38xf32>
      %363 = arith.addf %356, %362 : vector<16x38xf32>
      %c30 = arith.constant 30 : index
      %c0_237 = arith.constant 0 : index
      %364 = vector.load %arg3[%c30, %c0_237] : memref<49x38xf32, #tpu.memory_space<vmem>>, vector<1x38xf32>
      %365 = vector.shape_cast %364 : vector<1x38xf32> to vector<38xf32>
      %366 = vector.extract_strided_slice %335 {offsets = [4, 0], sizes = [16, 38], strides = [1, 1]} : vector<22x38xf32> to vector<16x38xf32>
      %367 = vector.shape_cast %365 : vector<38xf32> to vector<1x38xf32>
      %368 = vector.broadcast %367 : vector<1x38xf32> to vector<16x38xf32>
      %369 = arith.mulf %368, %366 : vector<16x38xf32>
      %370 = arith.addf %363, %369 : vector<16x38xf32>
      %c37_238 = arith.constant 37 : index
      %c0_239 = arith.constant 0 : index
      %371 = vector.load %arg3[%c37_238, %c0_239] : memref<49x38xf32, #tpu.memory_space<vmem>>, vector<1x38xf32>
      %372 = vector.shape_cast %371 : vector<1x38xf32> to vector<38xf32>
      %373 = vector.extract_strided_slice %335 {offsets = [5, 0], sizes = [16, 38], strides = [1, 1]} : vector<22x38xf32> to vector<16x38xf32>
      %374 = vector.shape_cast %372 : vector<38xf32> to vector<1x38xf32>
      %375 = vector.broadcast %374 : vector<1x38xf32> to vector<16x38xf32>
      %376 = arith.mulf %375, %373 : vector<16x38xf32>
      %377 = arith.addf %370, %376 : vector<16x38xf32>
      %c44 = arith.constant 44 : index
      %c0_240 = arith.constant 0 : index
      %378 = vector.load %arg3[%c44, %c0_240] : memref<49x38xf32, #tpu.memory_space<vmem>>, vector<1x38xf32>
      %379 = vector.shape_cast %378 : vector<1x38xf32> to vector<38xf32>
      %380 = vector.extract_strided_slice %335 {offsets = [6, 0], sizes = [16, 38], strides = [1, 1]} : vector<22x38xf32> to vector<16x38xf32>
      %381 = vector.shape_cast %379 : vector<38xf32> to vector<1x38xf32>
      %382 = vector.broadcast %381 : vector<1x38xf32> to vector<16x38xf32>
      %383 = arith.mulf %382, %380 : vector<16x38xf32>
      %384 = arith.addf %377, %383 : vector<16x38xf32>
      %c0_241 = arith.constant 0 : index
      %c3_242 = arith.constant 3 : index
      %385 = vector.load %arg8[%c0_241, %c3_242] : memref<22x44xf32, #tpu.memory_space<vmem>>, vector<22x38xf32>
      %c3_243 = arith.constant 3 : index
      %c0_244 = arith.constant 0 : index
      %386 = vector.load %arg3[%c3_243, %c0_244] : memref<49x38xf32, #tpu.memory_space<vmem>>, vector<1x38xf32>
      %387 = vector.shape_cast %386 : vector<1x38xf32> to vector<38xf32>
      %388 = vector.extract_strided_slice %385 {offsets = [0, 0], sizes = [16, 38], strides = [1, 1]} : vector<22x38xf32> to vector<16x38xf32>
      %389 = vector.shape_cast %387 : vector<38xf32> to vector<1x38xf32>
      %390 = vector.broadcast %389 : vector<1x38xf32> to vector<16x38xf32>
      %391 = arith.mulf %390, %388 : vector<16x38xf32>
      %392 = arith.addf %384, %391 : vector<16x38xf32>
      %c10_245 = arith.constant 10 : index
      %c0_246 = arith.constant 0 : index
      %393 = vector.load %arg3[%c10_245, %c0_246] : memref<49x38xf32, #tpu.memory_space<vmem>>, vector<1x38xf32>
      %394 = vector.shape_cast %393 : vector<1x38xf32> to vector<38xf32>
      %395 = vector.extract_strided_slice %385 {offsets = [1, 0], sizes = [16, 38], strides = [1, 1]} : vector<22x38xf32> to vector<16x38xf32>
      %396 = vector.shape_cast %394 : vector<38xf32> to vector<1x38xf32>
      %397 = vector.broadcast %396 : vector<1x38xf32> to vector<16x38xf32>
      %398 = arith.mulf %397, %395 : vector<16x38xf32>
      %399 = arith.addf %392, %398 : vector<16x38xf32>
      %c17_247 = arith.constant 17 : index
      %c0_248 = arith.constant 0 : index
      %400 = vector.load %arg3[%c17_247, %c0_248] : memref<49x38xf32, #tpu.memory_space<vmem>>, vector<1x38xf32>
      %401 = vector.shape_cast %400 : vector<1x38xf32> to vector<38xf32>
      %402 = vector.extract_strided_slice %385 {offsets = [2, 0], sizes = [16, 38], strides = [1, 1]} : vector<22x38xf32> to vector<16x38xf32>
      %403 = vector.shape_cast %401 : vector<38xf32> to vector<1x38xf32>
      %404 = vector.broadcast %403 : vector<1x38xf32> to vector<16x38xf32>
      %405 = arith.mulf %404, %402 : vector<16x38xf32>
      %406 = arith.addf %399, %405 : vector<16x38xf32>
      %c24_249 = arith.constant 24 : index
      %c0_250 = arith.constant 0 : index
      %407 = vector.load %arg3[%c24_249, %c0_250] : memref<49x38xf32, #tpu.memory_space<vmem>>, vector<1x38xf32>
      %408 = vector.shape_cast %407 : vector<1x38xf32> to vector<38xf32>
      %409 = vector.extract_strided_slice %385 {offsets = [3, 0], sizes = [16, 38], strides = [1, 1]} : vector<22x38xf32> to vector<16x38xf32>
      %410 = vector.shape_cast %408 : vector<38xf32> to vector<1x38xf32>
      %411 = vector.broadcast %410 : vector<1x38xf32> to vector<16x38xf32>
      %412 = arith.mulf %411, %409 : vector<16x38xf32>
      %413 = arith.addf %406, %412 : vector<16x38xf32>
      %c31 = arith.constant 31 : index
      %c0_251 = arith.constant 0 : index
      %414 = vector.load %arg3[%c31, %c0_251] : memref<49x38xf32, #tpu.memory_space<vmem>>, vector<1x38xf32>
      %415 = vector.shape_cast %414 : vector<1x38xf32> to vector<38xf32>
      %416 = vector.extract_strided_slice %385 {offsets = [4, 0], sizes = [16, 38], strides = [1, 1]} : vector<22x38xf32> to vector<16x38xf32>
      %417 = vector.shape_cast %415 : vector<38xf32> to vector<1x38xf32>
      %418 = vector.broadcast %417 : vector<1x38xf32> to vector<16x38xf32>
      %419 = arith.mulf %418, %416 : vector<16x38xf32>
      %420 = arith.addf %413, %419 : vector<16x38xf32>
      %c38_252 = arith.constant 38 : index
      %c0_253 = arith.constant 0 : index
      %421 = vector.load %arg3[%c38_252, %c0_253] : memref<49x38xf32, #tpu.memory_space<vmem>>, vector<1x38xf32>
      %422 = vector.shape_cast %421 : vector<1x38xf32> to vector<38xf32>
      %423 = vector.extract_strided_slice %385 {offsets = [5, 0], sizes = [16, 38], strides = [1, 1]} : vector<22x38xf32> to vector<16x38xf32>
      %424 = vector.shape_cast %422 : vector<38xf32> to vector<1x38xf32>
      %425 = vector.broadcast %424 : vector<1x38xf32> to vector<16x38xf32>
      %426 = arith.mulf %425, %423 : vector<16x38xf32>
      %427 = arith.addf %420, %426 : vector<16x38xf32>
      %c45 = arith.constant 45 : index
      %c0_254 = arith.constant 0 : index
      %428 = vector.load %arg3[%c45, %c0_254] : memref<49x38xf32, #tpu.memory_space<vmem>>, vector<1x38xf32>
      %429 = vector.shape_cast %428 : vector<1x38xf32> to vector<38xf32>
      %430 = vector.extract_strided_slice %385 {offsets = [6, 0], sizes = [16, 38], strides = [1, 1]} : vector<22x38xf32> to vector<16x38xf32>
      %431 = vector.shape_cast %429 : vector<38xf32> to vector<1x38xf32>
      %432 = vector.broadcast %431 : vector<1x38xf32> to vector<16x38xf32>
      %433 = arith.mulf %432, %430 : vector<16x38xf32>
      %434 = arith.addf %427, %433 : vector<16x38xf32>
      %c0_255 = arith.constant 0 : index
      %c4_256 = arith.constant 4 : index
      %435 = vector.load %arg8[%c0_255, %c4_256] : memref<22x44xf32, #tpu.memory_space<vmem>>, vector<22x38xf32>
      %c4_257 = arith.constant 4 : index
      %c0_258 = arith.constant 0 : index
      %436 = vector.load %arg3[%c4_257, %c0_258] : memref<49x38xf32, #tpu.memory_space<vmem>>, vector<1x38xf32>
      %437 = vector.shape_cast %436 : vector<1x38xf32> to vector<38xf32>
      %438 = vector.extract_strided_slice %435 {offsets = [0, 0], sizes = [16, 38], strides = [1, 1]} : vector<22x38xf32> to vector<16x38xf32>
      %439 = vector.shape_cast %437 : vector<38xf32> to vector<1x38xf32>
      %440 = vector.broadcast %439 : vector<1x38xf32> to vector<16x38xf32>
      %441 = arith.mulf %440, %438 : vector<16x38xf32>
      %442 = arith.addf %434, %441 : vector<16x38xf32>
      %c11_259 = arith.constant 11 : index
      %c0_260 = arith.constant 0 : index
      %443 = vector.load %arg3[%c11_259, %c0_260] : memref<49x38xf32, #tpu.memory_space<vmem>>, vector<1x38xf32>
      %444 = vector.shape_cast %443 : vector<1x38xf32> to vector<38xf32>
      %445 = vector.extract_strided_slice %435 {offsets = [1, 0], sizes = [16, 38], strides = [1, 1]} : vector<22x38xf32> to vector<16x38xf32>
      %446 = vector.shape_cast %444 : vector<38xf32> to vector<1x38xf32>
      %447 = vector.broadcast %446 : vector<1x38xf32> to vector<16x38xf32>
      %448 = arith.mulf %447, %445 : vector<16x38xf32>
      %449 = arith.addf %442, %448 : vector<16x38xf32>
      %c18_261 = arith.constant 18 : index
      %c0_262 = arith.constant 0 : index
      %450 = vector.load %arg3[%c18_261, %c0_262] : memref<49x38xf32, #tpu.memory_space<vmem>>, vector<1x38xf32>
      %451 = vector.shape_cast %450 : vector<1x38xf32> to vector<38xf32>
      %452 = vector.extract_strided_slice %435 {offsets = [2, 0], sizes = [16, 38], strides = [1, 1]} : vector<22x38xf32> to vector<16x38xf32>
      %453 = vector.shape_cast %451 : vector<38xf32> to vector<1x38xf32>
      %454 = vector.broadcast %453 : vector<1x38xf32> to vector<16x38xf32>
      %455 = arith.mulf %454, %452 : vector<16x38xf32>
      %456 = arith.addf %449, %455 : vector<16x38xf32>
      %c25_263 = arith.constant 25 : index
      %c0_264 = arith.constant 0 : index
      %457 = vector.load %arg3[%c25_263, %c0_264] : memref<49x38xf32, #tpu.memory_space<vmem>>, vector<1x38xf32>
      %458 = vector.shape_cast %457 : vector<1x38xf32> to vector<38xf32>
      %459 = vector.extract_strided_slice %435 {offsets = [3, 0], sizes = [16, 38], strides = [1, 1]} : vector<22x38xf32> to vector<16x38xf32>
      %460 = vector.shape_cast %458 : vector<38xf32> to vector<1x38xf32>
      %461 = vector.broadcast %460 : vector<1x38xf32> to vector<16x38xf32>
      %462 = arith.mulf %461, %459 : vector<16x38xf32>
      %463 = arith.addf %456, %462 : vector<16x38xf32>
      %c32_265 = arith.constant 32 : index
      %c0_266 = arith.constant 0 : index
      %464 = vector.load %arg3[%c32_265, %c0_266] : memref<49x38xf32, #tpu.memory_space<vmem>>, vector<1x38xf32>
      %465 = vector.shape_cast %464 : vector<1x38xf32> to vector<38xf32>
      %466 = vector.extract_strided_slice %435 {offsets = [4, 0], sizes = [16, 38], strides = [1, 1]} : vector<22x38xf32> to vector<16x38xf32>
      %467 = vector.shape_cast %465 : vector<38xf32> to vector<1x38xf32>
      %468 = vector.broadcast %467 : vector<1x38xf32> to vector<16x38xf32>
      %469 = arith.mulf %468, %466 : vector<16x38xf32>
      %470 = arith.addf %463, %469 : vector<16x38xf32>
      %c39_267 = arith.constant 39 : index
      %c0_268 = arith.constant 0 : index
      %471 = vector.load %arg3[%c39_267, %c0_268] : memref<49x38xf32, #tpu.memory_space<vmem>>, vector<1x38xf32>
      %472 = vector.shape_cast %471 : vector<1x38xf32> to vector<38xf32>
      %473 = vector.extract_strided_slice %435 {offsets = [5, 0], sizes = [16, 38], strides = [1, 1]} : vector<22x38xf32> to vector<16x38xf32>
      %474 = vector.shape_cast %472 : vector<38xf32> to vector<1x38xf32>
      %475 = vector.broadcast %474 : vector<1x38xf32> to vector<16x38xf32>
      %476 = arith.mulf %475, %473 : vector<16x38xf32>
      %477 = arith.addf %470, %476 : vector<16x38xf32>
      %c46 = arith.constant 46 : index
      %c0_269 = arith.constant 0 : index
      %478 = vector.load %arg3[%c46, %c0_269] : memref<49x38xf32, #tpu.memory_space<vmem>>, vector<1x38xf32>
      %479 = vector.shape_cast %478 : vector<1x38xf32> to vector<38xf32>
      %480 = vector.extract_strided_slice %435 {offsets = [6, 0], sizes = [16, 38], strides = [1, 1]} : vector<22x38xf32> to vector<16x38xf32>
      %481 = vector.shape_cast %479 : vector<38xf32> to vector<1x38xf32>
      %482 = vector.broadcast %481 : vector<1x38xf32> to vector<16x38xf32>
      %483 = arith.mulf %482, %480 : vector<16x38xf32>
      %484 = arith.addf %477, %483 : vector<16x38xf32>
      %c0_270 = arith.constant 0 : index
      %c5_271 = arith.constant 5 : index
      %485 = vector.load %arg8[%c0_270, %c5_271] : memref<22x44xf32, #tpu.memory_space<vmem>>, vector<22x38xf32>
      %c5_272 = arith.constant 5 : index
      %c0_273 = arith.constant 0 : index
      %486 = vector.load %arg3[%c5_272, %c0_273] : memref<49x38xf32, #tpu.memory_space<vmem>>, vector<1x38xf32>
      %487 = vector.shape_cast %486 : vector<1x38xf32> to vector<38xf32>
      %488 = vector.extract_strided_slice %485 {offsets = [0, 0], sizes = [16, 38], strides = [1, 1]} : vector<22x38xf32> to vector<16x38xf32>
      %489 = vector.shape_cast %487 : vector<38xf32> to vector<1x38xf32>
      %490 = vector.broadcast %489 : vector<1x38xf32> to vector<16x38xf32>
      %491 = arith.mulf %490, %488 : vector<16x38xf32>
      %492 = arith.addf %484, %491 : vector<16x38xf32>
      %c12_274 = arith.constant 12 : index
      %c0_275 = arith.constant 0 : index
      %493 = vector.load %arg3[%c12_274, %c0_275] : memref<49x38xf32, #tpu.memory_space<vmem>>, vector<1x38xf32>
      %494 = vector.shape_cast %493 : vector<1x38xf32> to vector<38xf32>
      %495 = vector.extract_strided_slice %485 {offsets = [1, 0], sizes = [16, 38], strides = [1, 1]} : vector<22x38xf32> to vector<16x38xf32>
      %496 = vector.shape_cast %494 : vector<38xf32> to vector<1x38xf32>
      %497 = vector.broadcast %496 : vector<1x38xf32> to vector<16x38xf32>
      %498 = arith.mulf %497, %495 : vector<16x38xf32>
      %499 = arith.addf %492, %498 : vector<16x38xf32>
      %c19_276 = arith.constant 19 : index
      %c0_277 = arith.constant 0 : index
      %500 = vector.load %arg3[%c19_276, %c0_277] : memref<49x38xf32, #tpu.memory_space<vmem>>, vector<1x38xf32>
      %501 = vector.shape_cast %500 : vector<1x38xf32> to vector<38xf32>
      %502 = vector.extract_strided_slice %485 {offsets = [2, 0], sizes = [16, 38], strides = [1, 1]} : vector<22x38xf32> to vector<16x38xf32>
      %503 = vector.shape_cast %501 : vector<38xf32> to vector<1x38xf32>
      %504 = vector.broadcast %503 : vector<1x38xf32> to vector<16x38xf32>
      %505 = arith.mulf %504, %502 : vector<16x38xf32>
      %506 = arith.addf %499, %505 : vector<16x38xf32>
      %c26_278 = arith.constant 26 : index
      %c0_279 = arith.constant 0 : index
      %507 = vector.load %arg3[%c26_278, %c0_279] : memref<49x38xf32, #tpu.memory_space<vmem>>, vector<1x38xf32>
      %508 = vector.shape_cast %507 : vector<1x38xf32> to vector<38xf32>
      %509 = vector.extract_strided_slice %485 {offsets = [3, 0], sizes = [16, 38], strides = [1, 1]} : vector<22x38xf32> to vector<16x38xf32>
      %510 = vector.shape_cast %508 : vector<38xf32> to vector<1x38xf32>
      %511 = vector.broadcast %510 : vector<1x38xf32> to vector<16x38xf32>
      %512 = arith.mulf %511, %509 : vector<16x38xf32>
      %513 = arith.addf %506, %512 : vector<16x38xf32>
      %c33 = arith.constant 33 : index
      %c0_280 = arith.constant 0 : index
      %514 = vector.load %arg3[%c33, %c0_280] : memref<49x38xf32, #tpu.memory_space<vmem>>, vector<1x38xf32>
      %515 = vector.shape_cast %514 : vector<1x38xf32> to vector<38xf32>
      %516 = vector.extract_strided_slice %485 {offsets = [4, 0], sizes = [16, 38], strides = [1, 1]} : vector<22x38xf32> to vector<16x38xf32>
      %517 = vector.shape_cast %515 : vector<38xf32> to vector<1x38xf32>
      %518 = vector.broadcast %517 : vector<1x38xf32> to vector<16x38xf32>
      %519 = arith.mulf %518, %516 : vector<16x38xf32>
      %520 = arith.addf %513, %519 : vector<16x38xf32>
      %c40 = arith.constant 40 : index
      %c0_281 = arith.constant 0 : index
      %521 = vector.load %arg3[%c40, %c0_281] : memref<49x38xf32, #tpu.memory_space<vmem>>, vector<1x38xf32>
      %522 = vector.shape_cast %521 : vector<1x38xf32> to vector<38xf32>
      %523 = vector.extract_strided_slice %485 {offsets = [5, 0], sizes = [16, 38], strides = [1, 1]} : vector<22x38xf32> to vector<16x38xf32>
      %524 = vector.shape_cast %522 : vector<38xf32> to vector<1x38xf32>
      %525 = vector.broadcast %524 : vector<1x38xf32> to vector<16x38xf32>
      %526 = arith.mulf %525, %523 : vector<16x38xf32>
      %527 = arith.addf %520, %526 : vector<16x38xf32>
      %c47 = arith.constant 47 : index
      %c0_282 = arith.constant 0 : index
      %528 = vector.load %arg3[%c47, %c0_282] : memref<49x38xf32, #tpu.memory_space<vmem>>, vector<1x38xf32>
      %529 = vector.shape_cast %528 : vector<1x38xf32> to vector<38xf32>
      %530 = vector.extract_strided_slice %485 {offsets = [6, 0], sizes = [16, 38], strides = [1, 1]} : vector<22x38xf32> to vector<16x38xf32>
      %531 = vector.shape_cast %529 : vector<38xf32> to vector<1x38xf32>
      %532 = vector.broadcast %531 : vector<1x38xf32> to vector<16x38xf32>
      %533 = arith.mulf %532, %530 : vector<16x38xf32>
      %534 = arith.addf %527, %533 : vector<16x38xf32>
      %c0_283 = arith.constant 0 : index
      %c6_284 = arith.constant 6 : index
      %535 = vector.load %arg8[%c0_283, %c6_284] : memref<22x44xf32, #tpu.memory_space<vmem>>, vector<22x38xf32>
      %c6_285 = arith.constant 6 : index
      %c0_286 = arith.constant 0 : index
      %536 = vector.load %arg3[%c6_285, %c0_286] : memref<49x38xf32, #tpu.memory_space<vmem>>, vector<1x38xf32>
      %537 = vector.shape_cast %536 : vector<1x38xf32> to vector<38xf32>
      %538 = vector.extract_strided_slice %535 {offsets = [0, 0], sizes = [16, 38], strides = [1, 1]} : vector<22x38xf32> to vector<16x38xf32>
      %539 = vector.shape_cast %537 : vector<38xf32> to vector<1x38xf32>
      %540 = vector.broadcast %539 : vector<1x38xf32> to vector<16x38xf32>
      %541 = arith.mulf %540, %538 : vector<16x38xf32>
      %542 = arith.addf %534, %541 : vector<16x38xf32>
      %c13_287 = arith.constant 13 : index
      %c0_288 = arith.constant 0 : index
      %543 = vector.load %arg3[%c13_287, %c0_288] : memref<49x38xf32, #tpu.memory_space<vmem>>, vector<1x38xf32>
      %544 = vector.shape_cast %543 : vector<1x38xf32> to vector<38xf32>
      %545 = vector.extract_strided_slice %535 {offsets = [1, 0], sizes = [16, 38], strides = [1, 1]} : vector<22x38xf32> to vector<16x38xf32>
      %546 = vector.shape_cast %544 : vector<38xf32> to vector<1x38xf32>
      %547 = vector.broadcast %546 : vector<1x38xf32> to vector<16x38xf32>
      %548 = arith.mulf %547, %545 : vector<16x38xf32>
      %549 = arith.addf %542, %548 : vector<16x38xf32>
      %c20_289 = arith.constant 20 : index
      %c0_290 = arith.constant 0 : index
      %550 = vector.load %arg3[%c20_289, %c0_290] : memref<49x38xf32, #tpu.memory_space<vmem>>, vector<1x38xf32>
      %551 = vector.shape_cast %550 : vector<1x38xf32> to vector<38xf32>
      %552 = vector.extract_strided_slice %535 {offsets = [2, 0], sizes = [16, 38], strides = [1, 1]} : vector<22x38xf32> to vector<16x38xf32>
      %553 = vector.shape_cast %551 : vector<38xf32> to vector<1x38xf32>
      %554 = vector.broadcast %553 : vector<1x38xf32> to vector<16x38xf32>
      %555 = arith.mulf %554, %552 : vector<16x38xf32>
      %556 = arith.addf %549, %555 : vector<16x38xf32>
      %c27_291 = arith.constant 27 : index
      %c0_292 = arith.constant 0 : index
      %557 = vector.load %arg3[%c27_291, %c0_292] : memref<49x38xf32, #tpu.memory_space<vmem>>, vector<1x38xf32>
      %558 = vector.shape_cast %557 : vector<1x38xf32> to vector<38xf32>
      %559 = vector.extract_strided_slice %535 {offsets = [3, 0], sizes = [16, 38], strides = [1, 1]} : vector<22x38xf32> to vector<16x38xf32>
      %560 = vector.shape_cast %558 : vector<38xf32> to vector<1x38xf32>
      %561 = vector.broadcast %560 : vector<1x38xf32> to vector<16x38xf32>
      %562 = arith.mulf %561, %559 : vector<16x38xf32>
      %563 = arith.addf %556, %562 : vector<16x38xf32>
      %c34 = arith.constant 34 : index
      %c0_293 = arith.constant 0 : index
      %564 = vector.load %arg3[%c34, %c0_293] : memref<49x38xf32, #tpu.memory_space<vmem>>, vector<1x38xf32>
      %565 = vector.shape_cast %564 : vector<1x38xf32> to vector<38xf32>
      %566 = vector.extract_strided_slice %535 {offsets = [4, 0], sizes = [16, 38], strides = [1, 1]} : vector<22x38xf32> to vector<16x38xf32>
      %567 = vector.shape_cast %565 : vector<38xf32> to vector<1x38xf32>
      %568 = vector.broadcast %567 : vector<1x38xf32> to vector<16x38xf32>
      %569 = arith.mulf %568, %566 : vector<16x38xf32>
      %570 = arith.addf %563, %569 : vector<16x38xf32>
      %c41_294 = arith.constant 41 : index
      %c0_295 = arith.constant 0 : index
      %571 = vector.load %arg3[%c41_294, %c0_295] : memref<49x38xf32, #tpu.memory_space<vmem>>, vector<1x38xf32>
      %572 = vector.shape_cast %571 : vector<1x38xf32> to vector<38xf32>
      %573 = vector.extract_strided_slice %535 {offsets = [5, 0], sizes = [16, 38], strides = [1, 1]} : vector<22x38xf32> to vector<16x38xf32>
      %574 = vector.shape_cast %572 : vector<38xf32> to vector<1x38xf32>
      %575 = vector.broadcast %574 : vector<1x38xf32> to vector<16x38xf32>
      %576 = arith.mulf %575, %573 : vector<16x38xf32>
      %577 = arith.addf %570, %576 : vector<16x38xf32>
      %c48_296 = arith.constant 48 : index
      %c0_297 = arith.constant 0 : index
      %578 = vector.load %arg3[%c48_296, %c0_297] : memref<49x38xf32, #tpu.memory_space<vmem>>, vector<1x38xf32>
      %579 = vector.shape_cast %578 : vector<1x38xf32> to vector<38xf32>
      %580 = vector.extract_strided_slice %535 {offsets = [6, 0], sizes = [16, 38], strides = [1, 1]} : vector<22x38xf32> to vector<16x38xf32>
      %581 = vector.shape_cast %579 : vector<38xf32> to vector<1x38xf32>
      %582 = vector.broadcast %581 : vector<1x38xf32> to vector<16x38xf32>
      %583 = arith.mulf %582, %580 : vector<16x38xf32>
      %584 = arith.addf %577, %583 : vector<16x38xf32>
      %c0_298 = arith.constant 0 : index
      %585 = memref.load %arg4[%c0_298] : memref<1xf32, #tpu.memory_space<smem>>
      %586 = vector.extract_strided_slice %584 {offsets = [0, 0], sizes = [16, 16], strides = [1, 1]} : vector<16x38xf32> to vector<16x16xf32>
      %587 = vector.extract_strided_slice %584 {offsets = [0, 22], sizes = [16, 16], strides = [1, 1]} : vector<16x38xf32> to vector<16x16xf32>
      %588 = arith.addf %586, %587 : vector<16x16xf32>
      %589 = vector.broadcast %585 : f32 to vector<16x16xf32>
      %590 = arith.addf %588, %589 : vector<16x16xf32>
      %c0_299 = arith.constant 0 : index
      %c0_300 = arith.constant 0 : index
      %c0_301 = arith.constant 0 : index
      %c0_302 = arith.constant 0 : index
      %591 = vector.load %arg5[%c0_299, %c0_300, %c0_301, %c0_302] : memref<1x1x16x16xf32, #tpu.memory_space<vmem>>, vector<1x1x16x16xf32>
      %592 = vector.shape_cast %591 : vector<1x1x16x16xf32> to vector<16x16xf32>
      %593 = vector.shape_cast %590 : vector<16x16xf32> to vector<1x1x16x16xf32>
      tpu.vector_store %arg5[%c0_299, %c0_300, %c0_301, %c0_302], %593 {strides = array<i32>} : memref<1x1x16x16xf32, #tpu.memory_space<vmem>>, vector<1x1x16x16xf32>,
    } else {
    }
    return
  }
  func.func @transform_0(%arg0: i32, %arg1: i32) -> (i32, i32, i32) {
    %c0_i32 = arith.constant 0 : i32
    %c0_i32_0 = arith.constant 0 : i32
    return %arg0, %arg1, %c0_i32 : i32, i32, i32
  }
  func.func @transform_1(%arg0: i32, %arg1: i32) -> (i32, i32) {
    %c0_i32 = arith.constant 0 : i32
    %c0_i32_0 = arith.constant 0 : i32
    %c0_i32_1 = arith.constant 0 : i32
    return %c0_i32, %c0_i32_0 : i32, i32
  }
  func.func @transform_2(%arg0: i32, %arg1: i32) -> i32 {
    %c0_i32 = arith.constant 0 : i32
    %c0_i32_0 = arith.constant 0 : i32
    return %c0_i32 : i32
  }
  func.func @transform_3(%arg0: i32, %arg1: i32) -> (i32, i32, i32, i32) {
    %c0_i32 = arith.constant 0 : i32
    %c0_i32_0 = arith.constant 0 : i32
    %c0_i32_1 = arith.constant 0 : i32
    %c0_i32_2 = arith.constant 0 : i32
    return %arg0, %c0_i32, %c0_i32_0, %c0_i32_1 : i32, i32, i32, i32
  }
}

</mosaic_0001>

<bundles_post_ra>
// kernel: tpu_custom_call.1
= control target key start
LH: loop header
LB: loop body
LE: loop exit
PB: predicated region body
PF: predicated region fallthrough
CT: control target
= control target key end

     0   :  { %s2645_s0 = inlined_call_operand.vmem [shape: f32[2,4,256], index: 0, kind: input, shape index: {}]   ;;  %s2646_s1 = inlined_call_operand.vmem [shape: f32[49,38], index: 1, kind: input, shape index: {}]   ;;  %s2647_s2 = inlined_call_operand.<no memory space> [shape: f32[1], index: 2, kind: input, shape index: {}]   ;;  %s2648_s3 = inlined_call_operand.hbm [shape: f32[2,1,16,16], index: 3, kind: output, shape index: {}]  }
   0x1   :  { %8 = sst [smem:[#allocation5]] %s2647_s2 }
   0x2   :  { %9 = vsyncpa [#allocation7], 0 }
   0x3   :  { %11 = vsyncpa [#allocation7 + $0x1], 0  ;;  %s1965_s14 = smov 0   ;;  %s1967_s15 = smov 0  }
   0x4   :  { %s1969_s16 = smov 0   ;;  %s1971_s17 = smov 0  }
   0x5   :  { %s1973_s18 = smov 0   ;;  %s1975_s19 = smov 0  }
   0x6 LB: > { %s1647_s2 = sadd.s32 4294967295, %s1909_s19   ;;  %s1648_s20 = sadd.s32 4294967294, %s1909_s19   ;;  %s1909_s19 = sphi %s1975_s19, %s17_s19   ;;  %s1905_s18 = sphi %s1973_s18, %s2657_s18   ;;  %s1901_s17 = sphi %s1971_s17, %s2656_s17   ;;  %s1897_s16 = sphi %s1969_s16, %s2655_s16   ;;  %s1893_s15 = sphi %s1967_s15, %s2654_s15   ;;  %s1889_s14 = sphi %s1965_s14, %s2653_s14  }
   0x7   : > { %s29_s21 = sadd.s32 1, %s1905_s18  ;;  %s106_s22 = sadd.s32 1, %s1897_s16 }
   0x8   : > { %p31_p0 = scmp.ge.s32.totalorder %s29_s21, 2  ;;  %p116_p1 = scmp.ne.s32.totalorder %s1897_s16, %s1893_s15 }
   0x9   : > { %p117_p2 = scmp.eq.s32.totalorder %s1647_s2, 1  ;;  %p122_p3 = scmp.ne.s32.totalorder %s1893_s15, %s1889_s14 }
   0xa   : > { %s2659_s21 = smov (%p31_p0, %s29_s21), 0  ;;  %p123_p5 = scmp.eq.s32.totalorder %s1648_s20, 1 }
   0xb   : > { %p2005_p4 = por %p117_p2, %p116_p1  ;;  %s103_s24 = ssub.s32 %s1905_s18, %s2659_s21 }
   0xc   : > { %p1651_p6 = scmp.ge.s32.totalorder %s1909_s19, 1  ;;  %p104_p7 = scmp.eq.s32.totalorder %s103_s24, 0 }
   0xd   : > { %p2012_p8 = por %p123_p5, %p122_p3  ;;  %p159_p9 = scmp.lt.s32.totalorder %s1909_s19, 3 }
   0xe   : > { %s2018_s26 = scalar_select %p104_p7, %s1897_s16, %s106_s22  }
   0xf   : > { %p160_p10 = pnand %p1651_p6, %p159_p9 }
  0x10   : > { %p187_p11 = scmp.lt.s32.totalorder (!%p160_p10), %s1901_s17, 1  ;;  %v200_v0 = vlaneseq (!%p160_p10)  ;;  %v1911_v2 = vmov (!%p160_p10), 0.0   ;;  %s1912_s5 = smov (!%p160_p10), 99   ;;  %vm241_vm1 = vcmask (!%p160_p10), 147480   ;;  %vm403_vm2 = vcmask (!%p160_p10), 7168  }
  0x11   : > { %163 = sbr.rel (%p160_p10) target bundleno = 2100 (0x834), region = 32  ;;  %s1913_s6 = smov (!%p160_p10), 3   ;;  %vm416_vm3 = vcmask (!%p160_p10), 15368   ;;  %vm429_vm4 = vcmask (!%p160_p10), 23568   ;;  %v1924_v44 = vmov (!%p160_p10), -inf   ;;  %vm442_vm5 = vcmask (!%p160_p10), 162968  }
  0x12   : > { %vm2022_vm0 = vcmp.lt.s32.totalorder (!%p160_p10), %v200_v0, 256  ;;  %s1914_s7 = smov (!%p160_p10), 83   ;;  %s1915_s8 = smov (!%p160_p10), 115   ;;  %vm455_vm6 = vcmask (!%p160_p10), 171168   ;;  %vm468_vm7 = vcmask (!%p160_p10), 179368   ;;  %vm493_vm8 = vcmask (!%p160_p10), 327880  }
  0x13   : > { %204 = vst.msk [vmem:[#allocation2] sm:$0x3] (!%p160_p10), %vm2022_vm0, %v1911_v2  ;;  %s1916_s9 = smov (!%p160_p10), 51   ;;  %s1917_s10 = smov (!%p160_p10), 67   ;;  %205 = vst.msk [vmem:[#allocation3] sm:$0x3] (!%p160_p10), %vm2022_vm0, %v1924_v44 }
  0x14   : > { %s1918_s11 = smov (!%p160_p10), 19   ;;  %s1919_s12 = smov (!%p160_p10), 35   ;;  %vm472_vm9 = vcmask (!%p160_p10), 172032   ;;  %vm655_vm10 = vcmask (!%p160_p10), 187568   ;;  %vm668_vm11 = vcmask (!%p160_p10), 195768   ;;  %vm681_vm12 = vcmask (!%p160_p10), 203968  }
  0x15   : > { %s1920_s13 = smov (!%p160_p10), 122   ;;  %s1921_s2 = smov (!%p160_p10), 124   ;;  %vm694_vm13 = vcmask (!%p160_p10), 343368   ;;  %vm707_vm14 = vcmask (!%p160_p10), 351568   ;;  %vm720_vm15 = vcmask (!%p160_p10), 359768  }
  0x16   : > { %s1922_s20 = smov (!%p160_p10), 126   ;;  %s1923_s22 = smov (!%p160_p10), 2  }
  0x17   : > { %s1925_s24 = smov (!%p160_p10), 4   ;;  %s1928_s29 = smov (!%p160_p10), 89  }
  0x18   : > { %s188_s27 = scalar_select %p187_p11, %s1901_s17, 1 }
  0x19   : > { %s1929_s30 = smov 57  }
  0x1a   : > { %s1744_s28 = sshll.u32 %s188_s27, 3  ;;  %v219_v9 = vld [vmem:[#allocation2] sm:$0x3]  ;;  %v226_v48 = vld [vmem:[#allocation3] sm:$0x3]  ;;  %s1926_s27 = smov 25  }
  0x1b   : > { %s195_s4 = scalar_lea.vmem %s2645_s0, %s1744_s28  ;;  %s1927_s28 = smov 121  }
  0x1c   : > { %v2031_v3 = vld [vmem:[%s195_s4] ss:$4 sm:$0x3]  ;;  %v2033_v4 = vld [vmem:[%s195_s4 + $0x1] ss:$4 sm:$0x3] }
  0x1d   : > { %v209_v5 = vadd.f32 %v2033_v4, %v2031_v3  ;;  %v2037_v6 = vld [vmem:[%s195_s4 + $0x2] ss:$4 sm:$0x3]  ;;  %v2039_v7 = vld [vmem:[%s195_s4 + $0x3] ss:$4 sm:$0x3]  ;;  %v210_v43 = vmax.f32 %v2031_v3, %v2033_v4 }
  0x1e   : > { %s1930_s4 = smov 9  }
  0x1f   : > { %v213_v8 = vadd.f32 %v2037_v6, %v209_v5  ;;  %v214_v45 = vmax.f32 %v210_v43, %v2037_v6 }
  0x21   : > { %v217_v10 = vadd.f32 %v2039_v7, %v213_v8  ;;  %v218_v47 = vmax.f32 %v214_v45, %v2039_v7 }
  0x23   : > { %v220_v11 = vadd.f32 %v219_v9, %v217_v10  ;;  %v227_v49 = vmax.f32 %v226_v48, %v218_v47  ;;  %v2129_v48 = vld [vmem:[%s2646_s1 + $0x7] ss:$0 sm:$0xff] }
  0x25   : > { %225 = vst.msk [vmem:[#allocation2] sm:$0x3] %vm2022_vm0, %v220_v11  ;;  %228 = vst.msk [vmem:[#allocation3] sm:$0x3] %vm2022_vm0, %v227_v49  ;;  %vm724_vm0 = vcmask 352432  }
  0x26   : > { %v2134_v49 = vld [vmem:[%s2646_s1 + $0xe] ss:$0 sm:$0xff] }
  0x2c   : > { %v1660_v12 = vld [vmem:[#allocation2] ss:$0 sm:$0xff]  ;;  %v1667_v13 = vld [vmem:[#allocation2 + $0x1] ss:$0 sm:$0xff]  ;;  %v1674_v52 = vld [vmem:[#allocation3] ss:$0 sm:$0xff] }
  0x2d   : > { %259 = vrot.lane.b32.xlu1 %v1660_v12, %s1912_s5  ;;  %238 = vrot.lane.b32.xlu0 %v1660_v12, %s1913_s6  ;;  %v1682_v55 = vld [vmem:[#allocation3 + $0x1] ss:$0 sm:$0xff] }
  0x31   : > { %269 = vrot.lane.b32.xlu1 %v1660_v12, %s1914_s7  ;;  %249 = vrot.lane.b32.xlu0 %v1660_v12, %s1915_s8 }
  0x35   : > { %289 = vrot.lane.b32.xlu1 %v1660_v12, %s1916_s9  ;;  %279 = vrot.lane.b32.xlu0 %v1660_v12, %s1917_s10 }
  0x39   : > { %309 = vrot.lane.b32.xlu1 %v1660_v12, %s1918_s11  ;;  %299 = vrot.lane.b32.xlu0 %v1660_v12, %s1919_s12 }
  0x3d   : > { %329 = vrot.lane.b32.xlu1 %v1667_v13, %s1915_s8  ;;  %319 = vrot.lane.b32.xlu0 %v1667_v13, %s1913_s6  ;;  %s1932_s6 = smov 73   ;;  %s1934_s8 = smov 6  }
  0x41   : > { %349 = vrot.lane.b32.xlu1 %v1667_v13, %s1914_s7  ;;  %339 = vrot.lane.b32.xlu0 %v1667_v13, %s1912_s5  ;;  %s1931_s5 = smov 105   ;;  %s1933_s7 = smov 41  }
  0x45   : > { %369 = vrot.lane.b32.xlu1 %v1667_v13, %s1916_s9  ;;  %359 = vrot.lane.b32.xlu0 %v1667_v13, %s1917_s10  ;;  %s1935_s9 = smov 127  }
  0x49   : > { %389 = vrot.lane.b32.xlu1 %v1667_v13, %s1918_s11  ;;  %379 = vrot.lane.b32.xlu0 %v1667_v13, %s1919_s12  ;;  %s1937_s11 = smov 123  }
  0x9f   : > { %v260_v14 = vpop.permute.xlu1 %259  ;;  %v239_v15 = vpop.permute.xlu0 %238 }
  0xa0   : > { %262 = vst.msk [vmem:[#allocation4 + $0x5] sm:$0x1] %vm241_vm1, %v260_v14  ;;  %242 = vst.msk [vmem:[#allocation4 + $0x3] sm:$0x1] %vm241_vm1, %v239_v15 }
  0xa3   : > { %v270_v16 = vpop.permute.xlu1 %269  ;;  %v250_v17 = vpop.permute.xlu0 %249 }
  0xa4   : > { %272 = vst.msk [vmem:[#allocation4 + $0x6] sm:$0x1] %vm241_vm1, %v270_v16  ;;  %252 = vst.msk [vmem:[#allocation4 + $0x4] sm:$0x1] %vm241_vm1, %v250_v17 }
  0xa7   : > { %v290_v18 = vpop.permute.xlu1 %289  ;;  %v280_v19 = vpop.permute.xlu0 %279 }
  0xa8   : > { %292 = vst.msk [vmem:[#allocation4 + $0x8] sm:$0x1] %vm241_vm1, %v290_v18  ;;  %282 = vst.msk [vmem:[#allocation4 + $0x7] sm:$0x1] %vm241_vm1, %v280_v19 }
  0xab   : > { %v310_v20 = vpop.permute.xlu1 %309  ;;  %v300_v21 = vpop.permute.xlu0 %299 }
  0xac   : > { %312 = vst.msk [vmem:[#allocation4 + $0xa] sm:$0x1] %vm241_vm1, %v310_v20  ;;  %302 = vst.msk [vmem:[#allocation4 + $0x9] sm:$0x1] %vm241_vm1, %v300_v21 }
  0xaf   : > { %v330_v22 = vpop.permute.xlu1 %329  ;;  %v320_v23 = vpop.permute.xlu0 %319 }
  0xb0   : > { %332 = vst.msk [vmem:[#allocation4 + $0xc] sm:$0x1] %vm241_vm1, %v330_v22  ;;  %322 = vst.msk [vmem:[#allocation4 + $0xb] sm:$0x1] %vm241_vm1, %v320_v23 }
  0xb3   : > { %v350_v24 = vpop.permute.xlu1 %349  ;;  %v340_v25 = vpop.permute.xlu0 %339  ;;  %v393_v26 = vld [vmem:[#allocation4 + $0x3] sm:$0xff] }
  0xb4   : > { %352 = vst.msk [vmem:[#allocation4 + $0xe] sm:$0x1] %vm241_vm1, %v350_v24  ;;  %342 = vst.msk [vmem:[#allocation4 + $0xd] sm:$0x1] %vm241_vm1, %v340_v25  ;;  %397 = vrot.lane.b32.xlu0 %v393_v26, %s1920_s13 }
  0xb7   : > { %v370_v27 = vpop.permute.xlu1 %369  ;;  %v360_v28 = vpop.permute.xlu0 %359 }
  0xb8   : > { %372 = vst.msk [vmem:[#allocation4 + $0x10] sm:$0x1] %vm241_vm1, %v370_v27  ;;  %362 = vst.msk [vmem:[#allocation4 + $0xf] sm:$0x1] %vm241_vm1, %v360_v28 }
  0xbb   : > { %v390_v29 = vpop.permute.xlu1 %389  ;;  %v380_v30 = vpop.permute.xlu0 %379 }
  0xbc   : > { %392 = vst.msk [vmem:[#allocation4 + $0x12] sm:$0x1] %vm241_vm1, %v390_v29  ;;  %382 = vst.msk [vmem:[#allocation4 + $0x11] sm:$0x1] %vm241_vm1, %v380_v30  ;;  %vm759_vm1 = vcmask 1046528  }
  0xc3   : > { %v394_v31 = vld [vmem:[#allocation4 + $0xb] sm:$0xff] }
  0xc4   : > { %399 = vrot.lane.b32.xlu1 %v394_v31, %s1920_s13 }
 0x126   : > { %v398_v32 = vpop.permute.xlu0 %397 }
 0x127   : > { %404 = vst.msk [vmem:[#allocation4 + $0x3] sm:$0xff] %vm403_vm2, %v398_v32 }
 0x12e   : > { %v406_v33 = vld [vmem:[#allocation4 + $0x3] sm:$0xff] }
 0x12f   : > { %410 = vrot.lane.b32.xlu0 %v406_v33, %s1921_s2 }
 0x136   : > { %v400_v34 = vpop.permute.xlu1 %399 }
 0x137   : > { %405 = vst.msk [vmem:[#allocation4 + $0xb] sm:$0xff] %vm403_vm2, %v400_v34  ;;  %vm780_vm2 = vcmask 1045504  }
 0x13e   : > { %v407_v35 = vld [vmem:[#allocation4 + $0xb] sm:$0xff] }
 0x13f   : > { %412 = vrot.lane.b32.xlu1 %v407_v35, %s1921_s2 }
 0x1a1   : > { %v411_v36 = vpop.permute.xlu0 %410 }
 0x1a2   : > { %417 = vst.msk [vmem:[#allocation4 + $0x3] sm:$0xff] %vm416_vm3, %v411_v36 }
 0x1a9   : > { %v419_v37 = vld [vmem:[#allocation4 + $0x3] sm:$0xff] }
 0x1aa   : > { %423 = vrot.lane.b32.xlu0 %v419_v37, %s1922_s20 }
 0x1b1   : > { %v413_v38 = vpop.permute.xlu1 %412 }
 0x1b2   : > { %418 = vst.msk [vmem:[#allocation4 + $0xb] sm:$0xff] %vm416_vm3, %v413_v38  ;;  %vm801_vm3 = vcmask 1044480  }
 0x1b9   : > { %v420_v39 = vld [vmem:[#allocation4 + $0xb] sm:$0xff] }
 0x1ba   : > { %425 = vrot.lane.b32.xlu1 %v420_v39, %s1922_s20 }
 0x21c   : > { %v424_v40 = vpop.permute.xlu0 %423 }
 0x21d   : > { %430 = vst.msk [vmem:[#allocation4 + $0x3] sm:$0xff] %vm429_vm4, %v424_v40 }
 0x224   : > { %v432_v41 = vld [vmem:[#allocation4 + $0x3] sm:$0xff] }
 0x225   : > { %436 = vrot.lane.b32.xlu0 %v432_v41, %s1923_s22 }
 0x22c   : > { %v426_v42 = vpop.permute.xlu1 %425 }
 0x22d   : > { %431 = vst.msk [vmem:[#allocation4 + $0xb] sm:$0xff] %vm429_vm4, %v426_v42  ;;  %vm822_vm4 = vcmask 1043456  }
 0x234   : > { %v433_v46 = vld [vmem:[#allocation4 + $0xb] sm:$0xff] }
 0x235   : > { %438 = vrot.lane.b32.xlu1 %v433_v46, %s1923_s22 }
 0x297   : > { %v437_v50 = vpop.permute.xlu0 %436 }
 0x298   : > { %443 = vst.msk [vmem:[#allocation4 + $0x3] sm:$0xff] %vm442_vm5, %v437_v50  ;;  %v2139_v50 = vld [vmem:[%s2646_s1] ss:$0 sm:$0xff] }
 0x29f   : > { %v445_v51 = vld [vmem:[#allocation4 + $0x3] sm:$0xff] }
 0x2a0   : > { %449 = vrot.lane.b32.xlu0 %v445_v51, %s1925_s24 }
 0x2a4   : > { %490 = vrot.lane.b32.xlu0 %v1674_v52, %s1926_s27 }
 0x2a7   : > { %v439_v53 = vpop.permute.xlu1 %438 }
 0x2a8   : > { %444 = vst.msk [vmem:[#allocation4 + $0xb] sm:$0xff] %vm442_vm5, %v439_v53  ;;  %511 = vrot.lane.b32.xlu0 %v1674_v52, %s1927_s28  ;;  %vm843_vm5 = vcmask 1042432  }
 0x2ac   : > { %531 = vrot.lane.b32.xlu0 %v1674_v52, %s1928_s29 }
 0x2af   : > { %v446_v54 = vld [vmem:[#allocation4 + $0xb] sm:$0xff] }
 0x2b0   : > { %451 = vrot.lane.b32.xlu1 %v446_v54, %s1925_s24  ;;  %551 = vrot.lane.b32.xlu0 %v1674_v52, %s1929_s30 }
 0x2b4   : > { %501 = vrot.lane.b32.xlu1 %v1674_v52, %s1930_s4  ;;  %571 = vrot.lane.b32.xlu0 %v1682_v55, %s1926_s27 }
 0x2b8   : > { %521 = vrot.lane.b32.xlu1 %v1674_v52, %s1931_s5  ;;  %591 = vrot.lane.b32.xlu0 %v1682_v55, %s1927_s28  ;;  %s1936_s28 = smov 125  }
 0x2bc   : > { %541 = vrot.lane.b32.xlu1 %v1674_v52, %s1932_s6 }
 0x2c0   : > { %561 = vrot.lane.b32.xlu1 %v1674_v52, %s1933_s7 }
 0x2c4   : > { %581 = vrot.lane.b32.xlu1 %v1682_v55, %s1930_s4 }
 0x2c8   : > { %601 = vrot.lane.b32.xlu1 %v1682_v55, %s1931_s5 }
 0x312   : > { %v450_v56 = vpop.permute.xlu0 %449 }
 0x313   : > { %456 = vst.msk [vmem:[#allocation4 + $0x3] sm:$0xff] %vm455_vm6, %v450_v56  ;;  %v1694_v56 = vld [vmem:[%s2646_s1 + $0x1c] ss:$0 sm:$0xff] }
 0x316   : > { %v491_v60 = vpop.permute.xlu0 %490 }
 0x31a   : > { %v458_v57 = vld [vmem:[#allocation4 + $0x3] sm:$0xff]  ;;  %v512_v61 = vpop.permute.xlu0 %511 }
 0x31b   : > { %462 = vrot.lane.b32.xlu0 %v458_v57, %s1934_s8 }
 0x31e   : > { %v532_v62 = vpop.permute.xlu0 %531 }
 0x31f   : > { %611 = vrot.lane.b32.xlu0 %v1682_v55, %s1928_s29 }
 0x322   : > { %v452_v58 = vpop.permute.xlu1 %451  ;;  %v552_v0 = vpop.permute.xlu0 %551 }
 0x323   : > { %457 = vst.msk [vmem:[#allocation4 + $0xb] sm:$0xff] %vm455_vm6, %v452_v58  ;;  %631 = vrot.lane.b32.xlu0 %v1682_v55, %s1929_s30  ;;  %vm864_vm6 = vcmask 1041408  }
 0x326   : > { %v502_v63 = vpop.permute.xlu1 %501  ;;  %v572_v2 = vpop.permute.xlu0 %571 }
 0x32a   : > { %v459_v59 = vld [vmem:[#allocation4 + $0xb] sm:$0xff]  ;;  %v522_v1 = vpop.permute.xlu1 %521  ;;  %v592_v4 = vpop.permute.xlu0 %591 }
 0x32b   : > { %464 = vrot.lane.b32.xlu1 %v459_v59, %s1934_s8 }
 0x32e   : > { %v542_v3 = vpop.permute.xlu1 %541 }
 0x32f   : > { %621 = vrot.lane.b32.xlu1 %v1682_v55, %s1932_s6  ;;  %s1938_s6 = smov 106  }
 0x332   : > { %v562_v5 = vpop.permute.xlu1 %561 }
 0x333   : > { %641 = vrot.lane.b32.xlu1 %v1682_v55, %s1933_s7  ;;  %v1693_v55 = vld [vmem:[%s2646_s1 + $0x15] ss:$0 sm:$0xff]  ;;  %s1537_s7 = sld [smem:[#allocation5]] }
 0x336   : > { %v582_v7 = vpop.permute.xlu1 %581 }
 0x33a   : > { %v602_v11 = vpop.permute.xlu1 %601 }
 0x38d   : > { %v463_v6 = vpop.permute.xlu0 %462 }
 0x38e   : > { %469 = vst.msk [vmem:[#allocation4 + $0x3] sm:$0xff] %vm468_vm7, %v463_v6 }
 0x38f   : > { %564 = vst.msk [vmem:[#allocation4 + $0xa] sm:$0x1] %vm493_vm8, %v562_v5  ;;  %494 = vst.msk [vmem:[#allocation4 + $0x3] sm:$0x1] %vm493_vm8, %v491_v60 }
 0x390   : > { %534 = vst.msk [vmem:[#allocation4 + $0x7] sm:$0x1] %vm493_vm8, %v532_v62  ;;  %544 = vst.msk [vmem:[#allocation4 + $0x8] sm:$0x1] %vm493_vm8, %v542_v3  ;;  %v1696_v62 = vld [vmem:[%s2646_s1 + $0x2a] ss:$0 sm:$0xff] }
 0x391   : > { %554 = vst.msk [vmem:[#allocation4 + $0x9] sm:$0x1] %vm493_vm8, %v552_v0  ;;  %v612_v14 = vpop.permute.xlu0 %611 }
 0x395   : > { %v471_v8 = vld [vmem:[#allocation4 + $0x6] sm:$0x1]  ;;  %v474_v9 = vld [vmem:[#allocation4 + $0x5] sm:$0x1]  ;;  %v476_v10 = vld [vmem:[#allocation4 + $0x4] sm:$0x1]  ;;  %v632_v16 = vpop.permute.xlu0 %631 }
 0x396   : > { %504 = vst.msk [vmem:[#allocation4 + $0x4] sm:$0x1] %vm493_vm8, %v502_v63  ;;  %514 = vst.msk [vmem:[#allocation4 + $0x5] sm:$0x1] %vm493_vm8, %v512_v61  ;;  %v1695_v61 = vld [vmem:[%s2646_s1 + $0x23] ss:$0 sm:$0xff] }
 0x397   : > { %524 = vst.msk [vmem:[#allocation4 + $0x6] sm:$0x1] %vm493_vm8, %v522_v1 }
 0x398   : > { %473 = vst.msk [vmem:[#allocation4] sm:$0x1] %vm472_vm9, %v471_v8  ;;  %475 = vst.msk [vmem:[#allocation4 + $0x1] sm:$0x1] %vm472_vm9, %v474_v9 }
 0x399   : > { %477 = vst.msk [vmem:[#allocation4 + $0x2] sm:$0x1] %vm472_vm9, %v476_v10 }
 0x39d   : > { %v465_v12 = vpop.permute.xlu1 %464 }
 0x39e   : > { %v645_v13 = vld [vmem:[#allocation4 + $0x3] sm:$0xff]  ;;  %470 = vst.msk [vmem:[#allocation4 + $0xb] sm:$0xff] %vm468_vm7, %v465_v12  ;;  %vm1551_vm7 = vcmask 130048  }
 0x39f   : > { %649 = vrot.lane.b32.xlu0 %v645_v13, %s1920_s13  ;;  %574 = vst.msk [vmem:[#allocation4 + $0xb] sm:$0x1] %vm493_vm8, %v572_v2  ;;  %584 = vst.msk [vmem:[#allocation4 + $0xc] sm:$0x1] %vm493_vm8, %v582_v7 }
 0x3a0   : > { %594 = vst.msk [vmem:[#allocation4 + $0xd] sm:$0x1] %vm493_vm8, %v592_v4  ;;  %604 = vst.msk [vmem:[#allocation4 + $0xe] sm:$0x1] %vm493_vm8, %v602_v11 }
 0x3a1   : > { %v622_v15 = vpop.permute.xlu1 %621 }
 0x3a5   : > { %v480_v17 = vld [vmem:[#allocation4 + $0x10] sm:$0x1]  ;;  %v482_v18 = vld [vmem:[#allocation4 + $0xf] sm:$0x1]  ;;  %v642_v19 = vpop.permute.xlu1 %641  ;;  %v478_v20 = vld [vmem:[#allocation4 + $0x11] sm:$0x1] }
 0x3a6   : > { %481 = vst.msk [vmem:[#allocation4 + $0x14] sm:$0x1] %vm472_vm9, %v480_v17  ;;  %483 = vst.msk [vmem:[#allocation4 + $0x15] sm:$0x1] %vm472_vm9, %v482_v18 }
 0x3a7   : > { %624 = vst.msk [vmem:[#allocation4 + $0x10] sm:$0x1] %vm493_vm8, %v622_v15  ;;  %614 = vst.msk [vmem:[#allocation4 + $0xf] sm:$0x1] %vm493_vm8, %v612_v14 }
 0x3a8   : > { %644 = vst.msk [vmem:[#allocation4 + $0x12] sm:$0x1] %vm493_vm8, %v642_v19  ;;  %634 = vst.msk [vmem:[#allocation4 + $0x11] sm:$0x1] %vm493_vm8, %v632_v16 }
 0x3a9   : > { %479 = vst.msk [vmem:[#allocation4 + $0x13] sm:$0x1] %vm472_vm9, %v478_v20 }
 0x3af   : > { %v646_v21 = vld [vmem:[#allocation4 + $0xb] sm:$0xff] }
 0x3b0   : > { %651 = vrot.lane.b32.xlu1 %v646_v21, %s1920_s13 }
 0x411   : > { %v650_v22 = vpop.permute.xlu0 %649 }
 0x412   : > { %656 = vst.msk [vmem:[#allocation4 + $0x3] sm:$0xff] %vm655_vm10, %v650_v22 }
 0x419   : > { %v658_v23 = vld [vmem:[#allocation4 + $0x3] sm:$0xff] }
 0x41a   : > { %662 = vrot.lane.b32.xlu0 %v658_v23, %s1921_s2 }
 0x422   : > { %v652_v24 = vpop.permute.xlu1 %651 }
 0x423   : > { %657 = vst.msk [vmem:[#allocation4 + $0xb] sm:$0xff] %vm655_vm10, %v652_v24 }
 0x42a   : > { %v659_v25 = vld [vmem:[#allocation4 + $0xb] sm:$0xff] }
 0x42b   : > { %664 = vrot.lane.b32.xlu1 %v659_v25, %s1921_s2 }
 0x48c   : > { %v663_v26 = vpop.permute.xlu0 %662 }
 0x48d   : > { %669 = vst.msk [vmem:[#allocation4 + $0x3] sm:$0xff] %vm668_vm11, %v663_v26 }
 0x494   : > { %v671_v27 = vld [vmem:[#allocation4 + $0x3] sm:$0xff] }
 0x495   : > { %675 = vrot.lane.b32.xlu0 %v671_v27, %s1922_s20 }
 0x49d   : > { %v665_v28 = vpop.permute.xlu1 %664 }
 0x49e   : > { %670 = vst.msk [vmem:[#allocation4 + $0xb] sm:$0xff] %vm668_vm11, %v665_v28 }
 0x4a5   : > { %v672_v29 = vld [vmem:[#allocation4 + $0xb] sm:$0xff] }
 0x4a6   : > { %677 = vrot.lane.b32.xlu1 %v672_v29, %s1922_s20 }
 0x507   : > { %v676_v30 = vpop.permute.xlu0 %675 }
 0x508   : > { %682 = vst.msk [vmem:[#allocation4 + $0x3] sm:$0xff] %vm681_vm12, %v676_v30 }
 0x50f   : > { %v684_v31 = vld [vmem:[#allocation4 + $0x3] sm:$0xff] }
 0x510   : > { %688 = vrot.lane.b32.xlu0 %v684_v31, %s1923_s22 }
 0x518   : > { %v678_v32 = vpop.permute.xlu1 %677 }
 0x519   : > { %683 = vst.msk [vmem:[#allocation4 + $0xb] sm:$0xff] %vm681_vm12, %v678_v32 }
 0x520   : > { %v685_v33 = vld [vmem:[#allocation4 + $0xb] sm:$0xff] }
 0x521   : > { %690 = vrot.lane.b32.xlu1 %v685_v33, %s1923_s22 }
 0x582   : > { %v689_v34 = vpop.permute.xlu0 %688 }
 0x583   : > { %695 = vst.msk [vmem:[#allocation4 + $0x3] sm:$0xff] %vm694_vm13, %v689_v34 }
 0x58a   : > { %v697_v35 = vld [vmem:[#allocation4 + $0x3] sm:$0xff] }
 0x58b   : > { %701 = vrot.lane.b32.xlu0 %v697_v35, %s1925_s24 }
 0x593   : > { %v691_v36 = vpop.permute.xlu1 %690 }
 0x594   : > { %696 = vst.msk [vmem:[#allocation4 + $0xb] sm:$0xff] %vm694_vm13, %v691_v36 }
 0x59b   : > { %v698_v37 = vld [vmem:[#allocation4 + $0xb] sm:$0xff] }
 0x59c   : > { %703 = vrot.lane.b32.xlu1 %v698_v37, %s1925_s24 }
 0x5fd   : > { %v702_v38 = vpop.permute.xlu0 %701 }
 0x5fe   : > { %708 = vst.msk [vmem:[#allocation4 + $0x3] sm:$0xff] %vm707_vm14, %v702_v38 }
 0x605   : > { %v710_v39 = vld [vmem:[#allocation4 + $0x3] sm:$0xff] }
 0x606   : > { %714 = vrot.lane.b32.xlu0 %v710_v39, %s1934_s8 }
 0x60e   : > { %v704_v40 = vpop.permute.xlu1 %703 }
 0x60f   : > { %709 = vst.msk [vmem:[#allocation4 + $0xb] sm:$0xff] %vm707_vm14, %v704_v40 }
 0x616   : > { %v711_v41 = vld [vmem:[#allocation4 + $0xb] sm:$0xff] }
 0x617   : > { %716 = vrot.lane.b32.xlu1 %v711_v41, %s1934_s8  ;;  %s184_s8 = sand.u32 1, %s1893_s15  }
 0x618   : > { %s1652_s10 = sshll.u32 %s184_s8, 4  ;;  %s2599_s24 = scalar_lea.sflag [#allocation7], %s184_s8 }
 0x678   : > { %v715_v42 = vpop.permute.xlu0 %714 }
 0x679   : > { %721 = vst.msk [vmem:[#allocation4 + $0x3] sm:$0xff] %vm720_vm15, %v715_v42 }
 0x680   : > { %v723_v43 = vld [vmem:[#allocation4 + $0x6] sm:$0x1]  ;;  %v726_v44 = vld [vmem:[#allocation4 + $0x5] sm:$0x1]  ;;  %v728_v45 = vld [vmem:[#allocation4 + $0x4] sm:$0x1] }
 0x681   : > { %725 = vst.msk [vmem:[#allocation4] sm:$0x1] %vm724_vm0, %v723_v43  ;;  %727 = vst.msk [vmem:[#allocation4 + $0x1] sm:$0x1] %vm724_vm0, %v726_v44 }
 0x682   : > { %729 = vst.msk [vmem:[#allocation4 + $0x2] sm:$0x1] %vm724_vm0, %v728_v45 }
 0x689   : > { %v2120_v46 = vld [vmem:[#allocation4] sm:$0xff]  ;;  %v717_v47 = vpop.permute.xlu1 %716 }
 0x68a   : > { %722 = vst.msk [vmem:[#allocation4 + $0xb] sm:$0xff] %vm720_vm15, %v717_v47  ;;  %881 = vrot.lane.b32.xlu0 %v2120_v46, %s1935_s9  ;;  %v753_v57 = vmul.f32 %v2129_v48, %v2120_v46  ;;  %v774_v58 = vmul.f32 %v2134_v49, %v2120_v46  ;;  %v744_v63 = vmul.f32 %v2139_v50, %v2120_v46  ;;  %v897_v21 = vrot.slane %v2120_v46, 1 }
 0x68b   : > { %v795_v0 = vmul.f32 %v1693_v55, %v2120_v46  ;;  %v816_v1 = vmul.f32 %v1694_v56, %v2120_v46  ;;  %v837_v12 = vmul.f32 %v1695_v61, %v2120_v46  ;;  %v858_v13 = vmul.f32 %v1696_v62, %v2120_v46 }
 0x68c   : > { %v760_v4 = vrot.slane %v753_v57, 1  ;;  %v781_v5 = vrot.slane %v774_v58, 2 }
 0x68d   : > { %v802_v17 = vrot.slane %v795_v0, 3  ;;  %v823_v24 = vrot.slane %v816_v1, 4  ;;  %v844_v25 = vrot.slane %v837_v12, 5  ;;  %v865_v26 = vrot.slane %v858_v13, 6 }
 0x68e   : > { %1017 = vrot.lane.b32.xlu0 %v2120_v46, %s1922_s20  ;;  %v937_v0 = vrot.slane %v2120_v46, 3 }
 0x691   : > { %v730_v51 = vld [vmem:[#allocation4 + $0x11] sm:$0x1]  ;;  %v732_v52 = vld [vmem:[#allocation4 + $0x10] sm:$0x1]  ;;  %v734_v53 = vld [vmem:[#allocation4 + $0xf] sm:$0x1] }
 0x692   : > { %731 = vst.msk [vmem:[#allocation4 + $0x13] sm:$0x1] %vm724_vm0, %v730_v51  ;;  %733 = vst.msk [vmem:[#allocation4 + $0x14] sm:$0x1] %vm724_vm0, %v732_v52  ;;  %v2144_v54 = vld [vmem:[#allocation4 + $0x8] sm:$0xff]  ;;  %1122 = vrot.lane.b32.xlu0 %v2120_v46, %s1936_s28 }
 0x693   : > { %735 = vst.msk [vmem:[#allocation4 + $0x15] sm:$0x1] %vm724_vm0, %v734_v53  ;;  %883 = vrot.lane.b32.xlu1 %v2144_v54, %s1935_s9  ;;  %v2162_v59 = vmul.f32 %v2129_v48, %v2144_v54  ;;  %v2166_v60 = vmul.f32 %v2134_v49, %v2144_v54  ;;  %v796_v6 = vmul.f32 %v1693_v55, %v2144_v54  ;;  %v898_v14 = vrot.slane %v2144_v54, 1 }
 0x694   : > { %v817_v7 = vmul.f32 %v1694_v56, %v2144_v54  ;;  %v838_v8 = vmul.f32 %v1695_v61, %v2144_v54  ;;  %v859_v9 = vmul.f32 %v1696_v62, %v2144_v54  ;;  %v918_v28 = vrot.slane %v2144_v54, 2 }
 0x695   : > { %v761_v2 = vrot.slane %v2162_v59, 1  ;;  %v782_v3 = vrot.slane %v2166_v60, 2  ;;  %v803_v15 = vrot.slane %v796_v6, 3  ;;  %v2204_v27 = vsel %vm759_vm1, %v897_v21, %v898_v14 }
 0x696   : > { %1227 = vrot.lane.b32.xlu0 %v2120_v46, %s1921_s2  ;;  %v824_v16 = vrot.slane %v817_v7, 4  ;;  %v845_v18 = vrot.slane %v838_v8, 5  ;;  %v866_v19 = vrot.slane %v859_v9, 6  ;;  %v745_v42 = vmul.f32 %v2139_v50, %v2144_v54 }
 0x697   : > { %1019 = vrot.lane.b32.xlu1 %v2144_v54, %s1922_s20  ;;  %v762_v10 = vsel %vm759_vm1, %v760_v4, %v761_v2  ;;  %v783_v11 = vsel %vm780_vm2, %v781_v5, %v782_v3  ;;  %v804_v23 = vsel %vm801_vm3, %v802_v17, %v803_v15  ;;  %v938_v60 = vrot.slane %v2144_v54, 3 }
 0x698   : > { %v767_v22 = vadd.f32 %v762_v10, %v744_v63  ;;  %v825_v30 = vsel %vm822_vm4, %v823_v24, %v824_v16  ;;  %v846_v31 = vsel %vm843_vm5, %v844_v25, %v845_v18  ;;  %v867_v32 = vsel %vm864_vm6, %v865_v26, %v866_v19 }
 0x699   : > { %v957_v7 = vrot.slane %v2120_v46, 4  ;;  %v978_v10 = vrot.slane %v2144_v54, 5 }
 0x69a   : > { %1332 = vrot.lane.b32.xlu0 %v2120_v46, %s1937_s11  ;;  %v2195_v20 = vld [vmem:[#allocation4 + $0x10] sm:$0x3f]  ;;  %v788_v29 = vadd.f32 %v783_v11, %v767_v22 }
 0x69b   : > { %1124 = vrot.lane.b32.xlu1 %v2144_v54, %s1936_s28  ;;  %v755_v33 = vmul.f32 %v2129_v48, %v2195_v20  ;;  %v776_v34 = vmul.f32 %v2134_v49, %v2195_v20  ;;  %v797_v36 = vmul.f32 %v1693_v55, %v2195_v20  ;;  %v818_v37 = vmul.f32 %v1694_v56, %v2195_v20 }
 0x69c   : > { %v809_v35 = vadd.f32 %v804_v23, %v788_v29  ;;  %v839_v38 = vmul.f32 %v1695_v61, %v2195_v20  ;;  %v860_v41 = vmul.f32 %v1696_v62, %v2195_v20  ;;  %v917_v48 = vrot.slane %v2120_v46, 2 }
 0x69d   : > { %v763_v39 = vrot.slane %v755_v33, 1  ;;  %v784_v40 = vrot.slane %v776_v34, 2  ;;  %v805_v44 = vrot.slane %v797_v36, 3  ;;  %v826_v45 = vrot.slane %v818_v37, 4 }
 0x69e   : > { %1437 = vrot.lane.b32.xlu0 %v2120_v46, %s1920_s13  ;;  %v830_v43 = vadd.f32 %v825_v30, %v809_v35  ;;  %v847_v47 = vrot.slane %v839_v38, 5  ;;  %v868_v49 = vrot.slane %v860_v41, 6  ;;  %v2236_v59 = vsel %vm780_vm2, %v917_v48, %v918_v28 }
 0x69f   : > { %1229 = vrot.lane.b32.xlu1 %v2144_v54, %s1921_s2  ;;  %v764_v51 = vsel %vm759_vm1, %v761_v2, %v763_v39  ;;  %v785_v52 = vsel %vm780_vm2, %v782_v3, %v784_v40  ;;  %v806_v50 = vsel %vm801_vm3, %v803_v15, %v805_v44  ;;  %v827_v56 = vsel %vm822_vm4, %v824_v16, %v826_v45  ;;  %v1698_v44 = vld [vmem:[%s2646_s1 + $0x8] ss:$0 sm:$0xff]  ;;  %v1699_v45 = vld [vmem:[%s2646_s1 + $0xf] ss:$0 sm:$0xff] }
 0x6a0   : > { %v851_v53 = vadd.f32 %v846_v31, %v830_v43  ;;  %v768_v55 = vadd.f32 %v764_v51, %v745_v42  ;;  %v848_v57 = vsel %vm843_vm5, %v845_v18, %v847_v47  ;;  %v869_v58 = vsel %vm864_vm6, %v866_v19, %v868_v49  ;;  %v1700_v51 = vld [vmem:[%s2646_s1 + $0x16] ss:$0 sm:$0xff] }
 0x6a1   : > { %v900_v63 = vrot.slane %v2195_v20, 1  ;;  %v2248_v2 = vsel %vm801_vm3, %v937_v0, %v938_v60  ;;  %v958_v3 = vrot.slane %v2144_v54, 4  ;;  %v920_v6 = vrot.slane %v2195_v20, 2 }
 0x6a2   : > { %902 = vrot.lane.b32.xlu0 %v2204_v27, %s1935_s9  ;;  %v2239_v61 = vadd.f32 %v867_v32, %v851_v53  ;;  %v789_v62 = vadd.f32 %v785_v52, %v768_v55  ;;  %v940_v13 = vrot.slane %v2195_v20, 3  ;;  %v998_v16 = vrot.slane %v2144_v54, 6 }
 0x6a3   : > { %1334 = vrot.lane.b32.xlu1 %v2144_v54, %s1937_s11  ;;  %v2254_v5 = vsel %vm759_vm1, %v898_v14, %v900_v63  ;;  %v2263_v9 = vsel %vm822_vm4, %v957_v7, %v958_v3  ;;  %v2269_v12 = vsel %vm780_vm2, %v918_v28, %v920_v6  ;;  %v977_v14 = vrot.slane %v2120_v46, 5 }
 0x6a4   : > { %v810_v1 = vadd.f32 %v806_v50, %v789_v62  ;;  %v2282_v17 = vsel %vm801_vm3, %v938_v60, %v940_v13  ;;  %v960_v18 = vrot.slane %v2195_v20, 4  ;;  %v997_v19 = vrot.slane %v2120_v46, 6 }
 0x6a5   : > { %v2278_v15 = vsel %vm843_vm5, %v977_v14, %v978_v10  ;;  %v1000_v46 = vrot.slane %v2195_v20, 6 }
 0x6a6   : > { %922 = vrot.lane.b32.xlu0 %v2236_v59, %s1935_s9  ;;  %v831_v4 = vadd.f32 %v827_v56, %v810_v1  ;;  %v2291_v21 = vsel %vm864_vm6, %v997_v19, %v998_v16  ;;  %v2294_v22 = vsel %vm822_vm4, %v958_v3, %v960_v18  ;;  %v1703_v1 = vld [vmem:[%s2646_s1 + $0x2b] ss:$0 sm:$0xff]  ;;  %v1704_v3 = vld [vmem:[%s2646_s1 + $0x2] ss:$0 sm:$0xff] }
 0x6a7   : > { %1439 = vrot.lane.b32.xlu1 %v2144_v54, %s1920_s13  ;;  %v980_v54 = vrot.slane %v2195_v20, 5  ;;  %v2310_v24 = vsel %vm864_vm6, %v998_v16, %v1000_v46  ;;  %v1697_v20 = vld [vmem:[%s2646_s1 + $0x1] ss:$0 sm:$0xff] }
 0x6a8   : > { %v852_v8 = vadd.f32 %v848_v57, %v831_v4  ;;  %v1702_v57 = vld [vmem:[%s2646_s1 + $0x24] ss:$0 sm:$0xff] }
 0x6a9   : > { %v2302_v23 = vsel %vm843_vm5, %v978_v10, %v980_v54 }
 0x6aa   : > { %942 = vrot.lane.b32.xlu0 %v2248_v2, %s1935_s9  ;;  %v2266_v11 = vadd.f32 %v869_v58, %v852_v8 }
 0x6ab   : > { %904 = vrot.lane.b32.xlu1 %v2254_v5, %s1935_s9 }
 0x6ae   : > { %962 = vrot.lane.b32.xlu0 %v2263_v9, %s1935_s9 }
 0x6af   : > { %924 = vrot.lane.b32.xlu1 %v2269_v12, %s1935_s9 }
 0x6b2   : > { %982 = vrot.lane.b32.xlu0 %v2278_v15, %s1935_s9 }
 0x6b3   : > { %944 = vrot.lane.b32.xlu1 %v2282_v17, %s1935_s9 }
 0x6b6   : > { %1002 = vrot.lane.b32.xlu0 %v2291_v21, %s1935_s9 }
 0x6b7   : > { %964 = vrot.lane.b32.xlu1 %v2294_v22, %s1935_s9 }
 0x6ba   : > { %1032 = vrot.lane.b32.xlu0 %v2204_v27, %s1922_s20 }
 0x6bb   : > { %984 = vrot.lane.b32.xlu1 %v2302_v23, %s1935_s9 }
 0x6be   : > { %1047 = vrot.lane.b32.xlu0 %v2236_v59, %s1922_s20 }
 0x6bf   : > { %1004 = vrot.lane.b32.xlu1 %v2310_v24, %s1935_s9  ;;  %s1745_s9 = sshll.u32 %s1901_s17, 8  ;;  %s1939_s17 = smov [#allocation6]  }
 0x6c0   : > { %s2595_s22 = scalar_lea.hbm %s2648_s3, %s1745_s9 }
 0x6c2   : > { %1062 = vrot.lane.b32.xlu0 %v2248_v2, %s1922_s20 }
 0x6c3   : > { %1034 = vrot.lane.b32.xlu1 %v2254_v5, %s1922_s20 }
 0x6c6   : > { %1077 = vrot.lane.b32.xlu0 %v2263_v9, %s1922_s20 }
 0x6c7   : > { %1049 = vrot.lane.b32.xlu1 %v2269_v12, %s1922_s20 }
 0x6ca   : > { %1092 = vrot.lane.b32.xlu0 %v2278_v15, %s1922_s20 }
 0x6cb   : > { %1064 = vrot.lane.b32.xlu1 %v2282_v17, %s1922_s20 }
 0x6ce   : > { %1107 = vrot.lane.b32.xlu0 %v2291_v21, %s1922_s20 }
 0x6cf   : > { %1079 = vrot.lane.b32.xlu1 %v2294_v22, %s1922_s20 }
 0x6d2   : > { %1137 = vrot.lane.b32.xlu0 %v2204_v27, %s1936_s28 }
 0x6d3   : > { %1094 = vrot.lane.b32.xlu1 %v2302_v23, %s1922_s20 }
 0x6d6   : > { %1152 = vrot.lane.b32.xlu0 %v2236_v59, %s1936_s28 }
 0x6d7   : > { %1109 = vrot.lane.b32.xlu1 %v2310_v24, %s1922_s20 }
 0x6da   : > { %1167 = vrot.lane.b32.xlu0 %v2248_v2, %s1936_s28 }
 0x6db   : > { %1139 = vrot.lane.b32.xlu1 %v2254_v5, %s1936_s28 }
 0x6de   : > { %1182 = vrot.lane.b32.xlu0 %v2263_v9, %s1936_s28 }
 0x6df   : > { %1154 = vrot.lane.b32.xlu1 %v2269_v12, %s1936_s28 }
 0x6e2   : > { %1197 = vrot.lane.b32.xlu0 %v2278_v15, %s1936_s28 }
 0x6e3   : > { %1169 = vrot.lane.b32.xlu1 %v2282_v17, %s1936_s28 }
 0x6e6   : > { %1212 = vrot.lane.b32.xlu0 %v2291_v21, %s1936_s28 }
 0x6e7   : > { %1184 = vrot.lane.b32.xlu1 %v2294_v22, %s1936_s28 }
 0x6ea   : > { %1242 = vrot.lane.b32.xlu0 %v2204_v27, %s1921_s2 }
 0x6eb   : > { %1199 = vrot.lane.b32.xlu1 %v2302_v23, %s1936_s28 }
 0x6ee   : > { %1257 = vrot.lane.b32.xlu0 %v2236_v59, %s1921_s2 }
 0x6ef   : > { %1214 = vrot.lane.b32.xlu1 %v2310_v24, %s1936_s28  ;;  %s1835_s28 = sshll.u32 %s1939_s17, 4  ;;  %s1836_s28 = int_to_ptr.vmem [resolvable:$false] %s1835_s28 }
 0x6f0   : > { %s1837_s29 = scalar_lea.vmem %s1836_s28, 512 }
 0x6f2   : > { %1272 = vrot.lane.b32.xlu0 %v2248_v2, %s1921_s2 }
 0x6f3   : > { %1244 = vrot.lane.b32.xlu1 %v2254_v5, %s1921_s2 }
 0x6f6   : > { %1287 = vrot.lane.b32.xlu0 %v2263_v9, %s1921_s2 }
 0x6f7   : > { %1259 = vrot.lane.b32.xlu1 %v2269_v12, %s1921_s2 }
 0x6fa   : > { %1302 = vrot.lane.b32.xlu0 %v2278_v15, %s1921_s2 }
 0x6fb   : > { %1274 = vrot.lane.b32.xlu1 %v2282_v17, %s1921_s2 }
 0x6fc   : > { %v882_v25 = vpop.permute.xlu0 %881 }
 0x6fd   : > { %v887_v26 = vmul.f32 %v1697_v20, %v882_v25 }
 0x6fe   : > { %1317 = vrot.lane.b32.xlu0 %v2291_v21, %s1921_s2 }
 0x6ff   : > { %v889_v28 = vadd.f32 %v887_v26, %v2239_v61  ;;  %1289 = vrot.lane.b32.xlu1 %v2294_v22, %s1921_s2 }
 0x700   : > { %v2384_v29 = vpop.permute.xlu0 %1017 }
 0x702   : > { %1347 = vrot.lane.b32.xlu0 %v2204_v27, %s1937_s11 }
 0x703   : > { %1304 = vrot.lane.b32.xlu1 %v2302_v23, %s1921_s2 }
 0x704   : > { %v2390_v30 = vpop.permute.xlu0 %1122 }
 0x705   : > { %v884_v31 = vpop.permute.xlu1 %883 }
 0x706   : > { %v888_v32 = vmul.f32 %v1697_v20, %v884_v31  ;;  %1362 = vrot.lane.b32.xlu0 %v2236_v59, %s1937_s11 }
 0x707   : > { %1319 = vrot.lane.b32.xlu1 %v2310_v24, %s1921_s2 }
 0x708   : > { %v890_v33 = vadd.f32 %v888_v32, %v2266_v11  ;;  %v2397_v34 = vpop.permute.xlu0 %1227 }
 0x709   : > { %v2399_v35 = vpop.permute.xlu1 %1019 }
 0x70a   : > { %1377 = vrot.lane.b32.xlu0 %v2248_v2, %s1937_s11 }
 0x70b   : > { %1349 = vrot.lane.b32.xlu1 %v2254_v5, %s1937_s11 }
 0x70c   : > { %v2405_v36 = vpop.permute.xlu0 %1332 }
 0x70d   : > { %v2407_v37 = vpop.permute.xlu1 %1124 }
 0x70e   : > { %1392 = vrot.lane.b32.xlu0 %v2263_v9, %s1937_s11 }
 0x70f   : > { %1364 = vrot.lane.b32.xlu1 %v2269_v12, %s1937_s11 }
 0x710   : > { %v2413_v38 = vpop.permute.xlu0 %1437 }
 0x711   : > { %v2415_v39 = vpop.permute.xlu1 %1229 }
 0x712   : > { %1407 = vrot.lane.b32.xlu0 %v2278_v15, %s1937_s11 }
 0x713   : > { %1379 = vrot.lane.b32.xlu1 %v2282_v17, %s1937_s11 }
 0x714   : > { %v903_v40 = vpop.permute.xlu0 %902 }
 0x715   : > { %v2421_v41 = vpop.permute.xlu1 %1334  ;;  %v908_v48 = vmul.f32 %v1698_v44, %v903_v40 }
 0x716   : > { %1422 = vrot.lane.b32.xlu0 %v2291_v21, %s1937_s11 }
 0x717   : > { %1394 = vrot.lane.b32.xlu1 %v2294_v22, %s1937_s11  ;;  %v910_v55 = vadd.f32 %v908_v48, %v889_v28 }
 0x718   : > { %v923_v42 = vpop.permute.xlu0 %922 }
 0x719   : > { %v2427_v43 = vpop.permute.xlu1 %1439  ;;  %v928_v52 = vmul.f32 %v1699_v45, %v923_v42  ;;  %v1707_v42 = vld [vmem:[%s2646_s1 + $0x17] ss:$0 sm:$0xff] }
 0x71a   : > { %1452 = vrot.lane.b32.xlu0 %v2204_v27, %s1920_s13  ;;  %v1701_v27 = vld [vmem:[%s2646_s1 + $0x1d] ss:$0 sm:$0xff] }
 0x71b   : > { %1409 = vrot.lane.b32.xlu1 %v2302_v23, %s1937_s11  ;;  %v930_v58 = vadd.f32 %v928_v52, %v910_v55 }
 0x71c   : > { %v943_v47 = vpop.permute.xlu0 %942 }
 0x71d   : > { %v905_v49 = vpop.permute.xlu1 %904  ;;  %v948_v50 = vmul.f32 %v1700_v51, %v943_v47 }
 0x71e   : > { %1467 = vrot.lane.b32.xlu0 %v2236_v59, %s1920_s13  ;;  %v909_v0 = vmul.f32 %v1698_v44, %v905_v49  ;;  %v1709_v49 = vld [vmem:[%s2646_s1 + $0x25] ss:$0 sm:$0xff] }
 0x71f   : > { %1424 = vrot.lane.b32.xlu1 %v2310_v24, %s1937_s11  ;;  %v950_v61 = vadd.f32 %v948_v50, %v930_v58  ;;  %v1711_v58 = vld [vmem:[%s2646_s1 + $0x3] ss:$0 sm:$0xff]  ;;  %s186_s11 = scalar_lea.vmem [#allocation6], %s1652_s10 }
 0x720   : > { %v963_v53 = vpop.permute.xlu0 %962  ;;  %v911_v10 = vadd.f32 %v909_v0, %v890_v33  ;;  %s1568_s20 = sshll.u32 %s186_s11, 4  ;;  %s2597_s20 = int_to_ptr.vmem [resolvable:$true] %s1568_s20 }
 0x721   : > { %v925_v56 = vpop.permute.xlu1 %924  ;;  %v968_v59 = vmul.f32 %v1701_v27, %v963_v53  ;;  %s1831_s27 = scalar_lea.vmem %s2597_s20, 256  ;;  %p1838_p1 = scmp.lt.s32.totalorder %s2597_s20, %s1836_s28 }
 0x722   : > { %1482 = vrot.lane.b32.xlu0 %v2248_v2, %s1920_s13  ;;  %v929_v4 = vmul.f32 %v1699_v45, %v925_v56  ;;  %p1832_p12 = scmp.ne.s32.totalorder %s2597_s20, %s1831_s27  ;;  %p1839_p2 = scmp.lt.s32.totalorder %s1837_s29, %s1831_s27 }
 0x723   : > { %1454 = vrot.lane.b32.xlu1 %v2254_v5, %s1920_s13  ;;  %v970_v2 = vadd.f32 %v968_v59, %v950_v61 }
 0x724   : > { %v983_v60 = vpop.permute.xlu0 %982  ;;  %p1833_p13 = pnand %p1832_p12, %p2005_p4  ;;  %p1840_p3 = por %p1839_p2, %p1838_p1 }
 0x725   : > { %v945_v62 = vpop.permute.xlu1 %944  ;;  %v988_v63 = vmul.f32 %v1702_v57, %v983_v60 }
 0x726   : > { %1497 = vrot.lane.b32.xlu0 %v2263_v9, %s1920_s13  ;;  %v949_v11 = vmul.f32 %v1700_v51, %v945_v62  ;;  %v1023_v9 = vmul.f32 %v1704_v3, %v2384_v29  ;;  %v1024_v29 = vmul.f32 %v1704_v3, %v2399_v35  ;;  %p1834_p0 = pneg %p1833_p13 }
 0x727   : > { %1469 = vrot.lane.b32.xlu1 %v2269_v12, %s1920_s13  ;;  %v990_v6 = vadd.f32 %v988_v63, %v970_v2  ;;  %v931_v12 = vadd.f32 %v929_v4, %v911_v10  ;;  %v1128_v2 = vmul.f32 %v1711_v58, %v2390_v30 }
 0x728   : > { %v1003_v5 = vpop.permute.xlu0 %1002  ;;  %p1841_p5 = pnand %p1840_p3, %p1834_p0 }
 0x729   : > { %v965_v7 = vpop.permute.xlu1 %964  ;;  %v1008_v8 = vmul.f32 %v1703_v1, %v1003_v5  ;;  %v951_v54 = vadd.f32 %v949_v11, %v931_v12 }
 0x72a   : > { %1512 = vrot.lane.b32.xlu0 %v2278_v15, %s1920_s13  ;;  %v969_v14 = vmul.f32 %v1701_v27, %v965_v7 }
 0x72b   : > { %v1010_v13 = vadd.f32 %v1008_v8, %v990_v6  ;;  %1484 = vrot.lane.b32.xlu1 %v2282_v17, %s1920_s13  ;;  %v1705_v17 = vld [vmem:[%s2646_s1 + $0x9] ss:$0 sm:$0xff] }
 0x72c   : > { %v1033_v16 = vpop.permute.xlu0 %1032  ;;  %v971_v15 = vadd.f32 %v969_v14, %v951_v54  ;;  %v1713_v54 = vld [vmem:[%s2646_s1 + $0x11] ss:$0 sm:$0xff] }
 0x72d   : > { %v1025_v18 = vadd.f32 %v1023_v9, %v1010_v13  ;;  %v985_v19 = vpop.permute.xlu1 %984  ;;  %v1038_v32 = vmul.f32 %v1705_v17, %v1033_v16  ;;  %v1712_v16 = vld [vmem:[%s2646_s1 + $0xa] ss:$0 sm:$0xff] }
 0x72e   : > { %v989_v46 = vmul.f32 %v1702_v57, %v985_v19  ;;  %1527 = vrot.lane.b32.xlu0 %v2291_v21, %s1920_s13  ;;  %v1706_v21 = vld [vmem:[%s2646_s1 + $0x10] ss:$0 sm:$0xff]  ;;  %v1129_v19 = vmul.f32 %v1711_v58, %v2407_v37 }
 0x72f   : > { %1499 = vrot.lane.b32.xlu1 %v2294_v22, %s1920_s13  ;;  %v1040_v45 = vadd.f32 %v1038_v32, %v1025_v18 }
 0x730   : > { %v1048_v20 = vpop.permute.xlu0 %1047  ;;  %v991_v26 = vadd.f32 %v989_v46, %v971_v15 }
 0x731   : > { %v1005_v25 = vpop.permute.xlu1 %1004  ;;  %v1053_v44 = vmul.f32 %v1706_v21, %v1048_v20 }
 0x732   : > { %v1009_v28 = vmul.f32 %v1703_v1, %v1005_v25 }
 0x733   : > { %1514 = vrot.lane.b32.xlu1 %v2302_v23, %s1920_s13  ;;  %v1708_v23 = vld [vmem:[%s2646_s1 + $0x1e] ss:$0 sm:$0xff]  ;;  %v1055_v51 = vadd.f32 %v1053_v44, %v1040_v45  ;;  %v1717_v45 = vld [vmem:[%s2646_s1 + $0x2d] ss:$0 sm:$0xff] }
 0x734   : > { %v1011_v31 = vadd.f32 %v1009_v28, %v991_v26  ;;  %v1063_v22 = vpop.permute.xlu0 %1062  ;;  %v1714_v26 = vld [vmem:[%s2646_s1 + $0x18] ss:$0 sm:$0xff]  ;;  %v1715_v28 = vld [vmem:[%s2646_s1 + $0x1f] ss:$0 sm:$0xff] }
 0x735   : > { %v1035_v33 = vpop.permute.xlu1 %1034  ;;  %v1068_v47 = vmul.f32 %v1707_v42, %v1063_v22  ;;  %v1716_v22 = vld [vmem:[%s2646_s1 + $0x26] ss:$0 sm:$0xff] }
 0x736   : > { %v1026_v40 = vadd.f32 %v1024_v29, %v1011_v31  ;;  %v1039_v56 = vmul.f32 %v1705_v17, %v1035_v33 }
 0x737   : > { %1529 = vrot.lane.b32.xlu1 %v2310_v24, %s1920_s13  ;;  %v1070_v53 = vadd.f32 %v1068_v47, %v1055_v51  ;;  %v1710_v24 = vld [vmem:[%s2646_s1 + $0x2c] ss:$0 sm:$0xff] }
 0x738   : > { %v1078_v35 = vpop.permute.xlu0 %1077  ;;  %v1041_v0 = vadd.f32 %v1039_v56, %v1026_v40 }
 0x739   : > { %v1050_v48 = vpop.permute.xlu1 %1049  ;;  %v1083_v52 = vmul.f32 %v1708_v23, %v1078_v35 }
 0x73a   : > { %v1054_v59 = vmul.f32 %v1706_v21, %v1050_v48  ;;  %v1718_v48 = vld [vmem:[%s2646_s1 + $0x4] ss:$0 sm:$0xff] }
 0x73b   : > { %v1085_v57 = vadd.f32 %v1083_v52, %v1070_v53  ;;  %v1233_v56 = vmul.f32 %v1718_v48, %v2397_v34 }
 0x73c   : > { %v1093_v27 = vpop.permute.xlu0 %1092  ;;  %v1056_v4 = vadd.f32 %v1054_v59, %v1041_v0 }
 0x73d   : > { %v1065_v55 = vpop.permute.xlu1 %1064  ;;  %v1098_v50 = vmul.f32 %v1709_v49, %v1093_v27 }
 0x73e   : > { %v1069_v1 = vmul.f32 %v1707_v42, %v1065_v55 }
 0x73f   : > { %v1100_v61 = vadd.f32 %v1098_v50, %v1085_v57 }
 0x740   : > { %v1108_v60 = vpop.permute.xlu0 %1107  ;;  %v1071_v10 = vadd.f32 %v1069_v1, %v1056_v4  ;;  %v1719_v4 = vld [vmem:[%s2646_s1 + $0xb] ss:$0 sm:$0xff] }
 0x741   : > { %v1080_v62 = vpop.permute.xlu1 %1079  ;;  %v1113_v63 = vmul.f32 %v1710_v24, %v1108_v60 }
 0x742   : > { %v1084_v5 = vmul.f32 %v1708_v23, %v1080_v62 }
 0x743   : > { %v1115_v3 = vadd.f32 %v1113_v63, %v1100_v61 }
 0x744   : > { %v1138_v6 = vpop.permute.xlu0 %1137  ;;  %v1086_v9 = vadd.f32 %v1084_v5, %v1071_v10 }
 0x745   : > { %v1095_v7 = vpop.permute.xlu1 %1094  ;;  %v1130_v8 = vadd.f32 %v1128_v2, %v1115_v3  ;;  %v1143_v15 = vmul.f32 %v1712_v16, %v1138_v6  ;;  %v1234_v6 = vmul.f32 %v1718_v48, %v2415_v39 }
 0x746   : > { %v1099_v11 = vmul.f32 %v1709_v49, %v1095_v7  ;;  %v1720_v7 = vld [vmem:[%s2646_s1 + $0x12] ss:$0 sm:$0xff] }
 0x747   : > { %v1145_v37 = vadd.f32 %v1143_v15, %v1130_v8 }
 0x748   : > { %v1153_v13 = vpop.permute.xlu0 %1152  ;;  %v1101_v14 = vadd.f32 %v1099_v11, %v1086_v9 }
 0x749   : > { %v1110_v12 = vpop.permute.xlu1 %1109  ;;  %v1158_v17 = vmul.f32 %v1713_v54, %v1153_v13  ;;  %v1721_v13 = vld [vmem:[%s2646_s1 + $0x19] ss:$0 sm:$0xff] }
 0x74a   : > { %v1114_v18 = vmul.f32 %v1710_v24, %v1110_v12 }
 0x74b   : > { %v1160_v32 = vadd.f32 %v1158_v17, %v1145_v37  ;;  %v1725_v37 = vld [vmem:[%s2646_s1 + $0x5] ss:$0 sm:$0xff] }
 0x74c   : > { %v1116_v30 = vadd.f32 %v1114_v18, %v1101_v14  ;;  %v1168_v46 = vpop.permute.xlu0 %1167  ;;  %v1722_v14 = vld [vmem:[%s2646_s1 + $0x20] ss:$0 sm:$0xff] }
 0x74d   : > { %v1140_v20 = vpop.permute.xlu1 %1139  ;;  %v1173_v31 = vmul.f32 %v1714_v26, %v1168_v46 }
 0x74e   : > { %v1131_v25 = vadd.f32 %v1129_v19, %v1116_v30  ;;  %v1144_v35 = vmul.f32 %v1712_v16, %v1140_v20  ;;  %v1723_v30 = vld [vmem:[%s2646_s1 + $0x27] ss:$0 sm:$0xff] }
 0x74f   : > { %v1175_v42 = vadd.f32 %v1173_v31, %v1160_v32 }
 0x750   : > { %v1183_v29 = vpop.permute.xlu0 %1182  ;;  %v1146_v55 = vadd.f32 %v1144_v35, %v1131_v25 }
 0x751   : > { %v1155_v21 = vpop.permute.xlu1 %1154  ;;  %v1188_v33 = vmul.f32 %v1715_v28, %v1183_v29 }
 0x752   : > { %v1159_v49 = vmul.f32 %v1713_v54, %v1155_v21 }
 0x753   : > { %v1190_v47 = vadd.f32 %v1188_v33, %v1175_v42 }
 0x754   : > { %v1198_v40 = vpop.permute.xlu0 %1197  ;;  %v1161_v57 = vadd.f32 %v1159_v49, %v1146_v55 }
 0x755   : > { %v1170_v44 = vpop.permute.xlu1 %1169  ;;  %v1203_v23 = vmul.f32 %v1716_v22, %v1198_v40 }
 0x756   : > { %v1174_v50 = vmul.f32 %v1714_v26, %v1170_v44  ;;  %v1338_v44 = vmul.f32 %v1725_v37, %v2405_v36 }
 0x757   : > { %v1205_v52 = vadd.f32 %v1203_v23, %v1190_v47 }
 0x758   : > { %v1213_v51 = vpop.permute.xlu0 %1212  ;;  %v1176_v62 = vadd.f32 %v1174_v50, %v1161_v57  ;;  %v1339_v57 = vmul.f32 %v1725_v37, %v2421_v41 }
 0x759   : > { %v1185_v27 = vpop.permute.xlu1 %1184  ;;  %v1218_v53 = vmul.f32 %v1717_v45, %v1213_v51 }
 0x75a   : > { %v1189_v58 = vmul.f32 %v1715_v28, %v1185_v27  ;;  %v1724_v28 = vld [vmem:[%s2646_s1 + $0x2e] ss:$0 sm:$0xff] }
 0x75b   : > { %v1220_v24 = vadd.f32 %v1218_v53, %v1205_v52 }
 0x75c   : > { %v1243_v59 = vpop.permute.xlu0 %1242  ;;  %v1191_v0 = vadd.f32 %v1189_v58, %v1176_v62  ;;  %v1727_v58 = vld [vmem:[%s2646_s1 + $0x13] ss:$0 sm:$0xff] }
 0x75d   : > { %v1200_v60 = vpop.permute.xlu1 %1199  ;;  %v1235_v61 = vadd.f32 %v1233_v56, %v1220_v24  ;;  %v1248_v10 = vmul.f32 %v1719_v4, %v1243_v59  ;;  %v1726_v56 = vld [vmem:[%s2646_s1 + $0xc] ss:$0 sm:$0xff] }
 0x75e   : > { %v1204_v63 = vmul.f32 %v1716_v22, %v1200_v60 }
 0x75f   : > { %v1250_v39 = vadd.f32 %v1248_v10, %v1235_v61 }
 0x760   : > { %v1258_v1 = vpop.permute.xlu0 %1257  ;;  %v1206_v3 = vadd.f32 %v1204_v63, %v1191_v0  ;;  %v1728_v63 = vld [vmem:[%s2646_s1 + $0x1a] ss:$0 sm:$0xff] }
 0x761   : > { %v1215_v2 = vpop.permute.xlu1 %1214  ;;  %v1263_v12 = vmul.f32 %v1720_v7, %v1258_v1  ;;  %v1729_v1 = vld [vmem:[%s2646_s1 + $0x21] ss:$0 sm:$0xff] }
 0x762   : > { %v1219_v5 = vmul.f32 %v1717_v45, %v1215_v2 }
 0x763   : > { %v1265_v54 = vadd.f32 %v1263_v12, %v1250_v39 }
 0x764   : > { %v1221_v34 = vadd.f32 %v1219_v5, %v1206_v3  ;;  %v1273_v8 = vpop.permute.xlu0 %1272  ;;  %v1730_v5 = vld [vmem:[%s2646_s1 + $0x28] ss:$0 sm:$0xff] }
 0x765   : > { %v1245_v11 = vpop.permute.xlu1 %1244  ;;  %v1278_v18 = vmul.f32 %v1721_v13, %v1273_v8 }
 0x766   : > { %v1236_v9 = vadd.f32 %v1234_v6, %v1221_v34  ;;  %v1249_v17 = vmul.f32 %v1719_v4, %v1245_v11 }
 0x767   : > { %v1280_v20 = vadd.f32 %v1278_v18, %v1265_v54 }
 0x768   : > { %v1288_v16 = vpop.permute.xlu0 %1287  ;;  %v1251_v40 = vadd.f32 %v1249_v17, %v1236_v9 }
 0x769   : > { %v1260_v19 = vpop.permute.xlu1 %1259  ;;  %v1293_v46 = vmul.f32 %v1722_v14, %v1288_v16 }
 0x76a   : > { %v1264_v31 = vmul.f32 %v1720_v7, %v1260_v19 }
 0x76b   : > { %v1295_v29 = vadd.f32 %v1293_v46, %v1280_v20 }
 0x76c   : > { %v1303_v15 = vpop.permute.xlu0 %1302  ;;  %v1266_v35 = vadd.f32 %v1264_v31, %v1251_v40  ;;  %v1733_v40 = vld [vmem:[%s2646_s1 + $0xd] ss:$0 sm:$0xff] }
 0x76d   : > { %v1275_v25 = vpop.permute.xlu1 %1274  ;;  %v1308_v26 = vmul.f32 %v1723_v30, %v1303_v15 }
 0x76e   : > { %v1279_v42 = vmul.f32 %v1721_v13, %v1275_v25  ;;  %v1731_v13 = vld [vmem:[%s2646_s1 + $0x2f] ss:$0 sm:$0xff] }
 0x76f   : > { %v1310_v22 = vadd.f32 %v1308_v26, %v1295_v29 }
 0x770   : > { %v1318_v21 = vpop.permute.xlu0 %1317  ;;  %v1281_v51 = vadd.f32 %v1279_v42, %v1266_v35 }
 0x771   : > { %v1290_v32 = vpop.permute.xlu1 %1289  ;;  %v1323_v33 = vmul.f32 %v1724_v28, %v1318_v21 }
 0x772   : > { %v1294_v45 = vmul.f32 %v1722_v14, %v1290_v32  ;;  %v1732_v14 = vld [vmem:[%s2646_s1 + $0x6] ss:$0 sm:$0xff] }
 0x773   : > { %v1325_v23 = vadd.f32 %v1323_v33, %v1310_v22  ;;  %v1443_v15 = vmul.f32 %v1732_v14, %v2413_v38 }
 0x774   : > { %v1348_v47 = vpop.permute.xlu0 %1347  ;;  %v1296_v27 = vadd.f32 %v1294_v45, %v1281_v51 }
 0x775   : > { %v1305_v48 = vpop.permute.xlu1 %1304  ;;  %v1340_v49 = vadd.f32 %v1338_v44, %v1325_v23  ;;  %v1353_v60 = vmul.f32 %v1726_v56, %v1348_v47  ;;  %v1444_v44 = vmul.f32 %v1732_v14, %v2427_v43  ;;  %v1734_v23 = vld [vmem:[%s2646_s1 + $0x14] ss:$0 sm:$0xff] }
 0x776   : > { %v1309_v52 = vmul.f32 %v1723_v30, %v1305_v48 }
 0x777   : > { %v1355_v41 = vadd.f32 %v1353_v60, %v1340_v49  ;;  %v1735_v49 = vld [vmem:[%s2646_s1 + $0x1b] ss:$0 sm:$0xff] }
 0x778   : > { %v1363_v53 = vpop.permute.xlu0 %1362  ;;  %v1311_v50 = vadd.f32 %v1309_v52, %v1296_v27  ;;  %v1736_v52 = vld [vmem:[%s2646_s1 + $0x22] ss:$0 sm:$0xff] }
 0x779   : > { %v1320_v55 = vpop.permute.xlu1 %1319  ;;  %v1368_v0 = vmul.f32 %v1727_v58, %v1363_v53 }
 0x77a   : > { %v1324_v24 = vmul.f32 %v1724_v28, %v1320_v55 }
 0x77b   : > { %v1370_v6 = vadd.f32 %v1368_v0, %v1355_v41 }
 0x77c   : > { %v1326_v36 = vadd.f32 %v1324_v24, %v1311_v50  ;;  %v1378_v59 = vpop.permute.xlu0 %1377  ;;  %v1737_v50 = vld [vmem:[%s2646_s1 + $0x29] ss:$0 sm:$0xff] }
 0x77d   : > { %v1350_v61 = vpop.permute.xlu1 %1349  ;;  %v1383_v3 = vmul.f32 %v1728_v63, %v1378_v59 }
 0x77e   : > { %v1341_v62 = vadd.f32 %v1339_v57, %v1326_v36  ;;  %v1354_v9 = vmul.f32 %v1726_v56, %v1350_v61  ;;  %v1738_v61 = vld [vmem:[%s2646_s1 + $0x30] ss:$0 sm:$0xff] }
 0x77f   : > { %v1385_v8 = vadd.f32 %v1383_v3, %v1370_v6 }
 0x780   : > { %v1393_v2 = vpop.permute.xlu0 %1392  ;;  %v1356_v54 = vadd.f32 %v1354_v9, %v1341_v62 }
 0x781   : > { %v1365_v4 = vpop.permute.xlu1 %1364  ;;  %v1398_v34 = vmul.f32 %v1729_v1, %v1393_v2 }
 0x782   : > { %v1369_v16 = vmul.f32 %v1727_v58, %v1365_v4 }
 0x783   : > { %v1400_v12 = vadd.f32 %v1398_v34, %v1385_v8 }
 0x784   : > { %v1408_v7 = vpop.permute.xlu0 %1407  ;;  %v1371_v25 = vadd.f32 %v1369_v16, %v1356_v54  ;;  %v1548_v16 = vstv %s1537_s7 }
 0x785   : > { %v1380_v10 = vpop.permute.xlu1 %1379  ;;  %v1413_v11 = vmul.f32 %v1730_v5, %v1408_v7 }
 0x786   : > { %v1384_v46 = vmul.f32 %v1728_v63, %v1380_v10 }
 0x787   : > { %v1415_v18 = vadd.f32 %v1413_v11, %v1400_v12 }
 0x788   : > { %v1423_v39 = vpop.permute.xlu0 %1422  ;;  %v1386_v37 = vadd.f32 %v1384_v46, %v1371_v25 }
 0x789   : > { %v1395_v19 = vpop.permute.xlu1 %1394  ;;  %v1428_v30 = vmul.f32 %v1731_v13, %v1423_v39 }
 0x78a   : > { %v1399_v26 = vmul.f32 %v1729_v1, %v1395_v19 }
 0x78b   : > { %v1430_v20 = vadd.f32 %v1428_v30, %v1415_v18 }
 0x78c   : > { %v1453_v17 = vpop.permute.xlu0 %1452  ;;  %v1401_v21 = vadd.f32 %v1399_v26, %v1386_v37 }
 0x78d   : > { %v1410_v28 = vpop.permute.xlu1 %1409  ;;  %v1445_v29 = vadd.f32 %v1443_v15, %v1430_v20  ;;  %v1458_v45 = vmul.f32 %v1733_v40, %v1453_v17 }
 0x78e   : > { %v1414_v31 = vmul.f32 %v1730_v5, %v1410_v28 }
 0x78f   : > { %v1460_v43 = vadd.f32 %v1458_v45, %v1445_v29 }
 0x790   : > { %v1468_v22 = vpop.permute.xlu0 %1467  ;;  %v1416_v33 = vadd.f32 %v1414_v31, %v1401_v21 }
 0x791   : > { %v1425_v32 = vpop.permute.xlu1 %1424  ;;  %v1473_v51 = vmul.f32 %v1734_v23, %v1468_v22 }
 0x792   : > { %v1429_v42 = vmul.f32 %v1731_v13, %v1425_v32 }
 0x793   : > { %v1475_v56 = vadd.f32 %v1473_v51, %v1460_v43 }
 0x794   : > { %v1431_v38 = vadd.f32 %v1429_v42, %v1416_v33  ;;  %v1483_v35 = vpop.permute.xlu0 %1482 }
 0x795   : > { %v1455_v47 = vpop.permute.xlu1 %1454  ;;  %v1488_v53 = vmul.f32 %v1735_v49, %v1483_v35 }
 0x796   : > { %v1446_v48 = vadd.f32 %v1444_v44, %v1431_v38  ;;  %v1459_v60 = vmul.f32 %v1733_v40, %v1455_v47 }
 0x797   : > { %v1490_v36 = vadd.f32 %v1488_v53, %v1475_v56 }
 0x798   : > { %v1498_v27 = vpop.permute.xlu0 %1497  ;;  %v1461_v3 = vadd.f32 %v1459_v60, %v1446_v48 }
 0x799   : > { %v1470_v55 = vpop.permute.xlu1 %1469  ;;  %v1503_v24 = vmul.f32 %v1736_v52, %v1498_v27 }
 0x79a   : > { %v1474_v63 = vmul.f32 %v1734_v23, %v1470_v55 }
 0x79b   : > { %v1505_v62 = vadd.f32 %v1503_v24, %v1490_v36 }
 0x79c   : > { %v1513_v57 = vpop.permute.xlu0 %1512  ;;  %v1476_v6 = vadd.f32 %v1474_v63, %v1461_v3 }
 0x79d   : > { %v1485_v58 = vpop.permute.xlu1 %1484  ;;  %v1518_v59 = vmul.f32 %v1737_v50, %v1513_v57 }
 0x79e   : > { %v1489_v4 = vmul.f32 %v1735_v49, %v1485_v58 }
 0x79f   : > { %v1520_v1 = vadd.f32 %v1518_v59, %v1505_v62 }
 0x7a0   : > { %v1528_v0 = vpop.permute.xlu0 %1527  ;;  %v1491_v8 = vadd.f32 %v1489_v4, %v1476_v6 }
 0x7a1   : > { %v1500_v2 = vpop.permute.xlu1 %1499  ;;  %v1533_v41 = vmul.f32 %v1738_v61, %v1528_v0 }
 0x7a2   : > { %v1504_v34 = vmul.f32 %v1736_v52, %v1500_v2 }
 0x7a3   : > { %v1535_v5 = vadd.f32 %v1533_v41, %v1520_v1 }
 0x7a4   : > { %v1506_v11 = vadd.f32 %v1504_v34, %v1491_v8 }
 0x7a5   : > { %v1515_v7 = vpop.permute.xlu1 %1514  ;;  %1540 = vrot.lane.b32.xlu0 %v1535_v5, %s1938_s6 }
 0x7a6   : > { %v1519_v10 = vmul.f32 %v1737_v50, %v1515_v7 }
 0x7a8   : > { %v1521_v13 = vadd.f32 %v1519_v10, %v1506_v11 }
 0x7a9   : > { %v1530_v9 = vpop.permute.xlu1 %1529 }
 0x7aa   : > { %v1534_v12 = vmul.f32 %v1738_v61, %v1530_v9 }
 0x7ac   : > { %v1536_v14 = vadd.f32 %v1534_v12, %v1521_v13 }
 0x7ae   : > { %1542 = vrot.lane.b32.xlu1 %v1536_v14, %s1938_s6 }
 0x817   : > { %v1541_v39 = vpop.permute.xlu0 %1540 }
 0x818   : > { %v1546_v18 = vadd.f32 %v1541_v39, %v1535_v5 }
 0x81a   : > { %v1549_v19 = vadd.f32 %v1548_v16, %v1546_v18 }
 0x81c   : > { %1552 = vst.msk [vmem:[%s186_s11] sm:$0xff] %vm1551_vm7, %v1549_v19 }
 0x820   : > { %v1543_v30 = vpop.permute.xlu1 %1542 }
 0x821   : > { %v1547_v54 = vadd.f32 %v1543_v30, %v1536_v14 }
 0x823   : > { %v1550_v46 = vadd.f32 %v1548_v16, %v1547_v54 }
 0x825   : > { %1553 = vst.msk [vmem:[%s186_s11 + $0x8] sm:$0xff] %vm1551_vm7, %v1550_v46 }
 0x826   : > { %1844 = shalt.err (!%p1841_p5)
}
 0x827   : > { %s1845_s13 = scalar_lea.hbm %s2595_s22, 256  ;;  %s1849_s5 = scalar_lea.hbm %s2648_s3, 512 }
 0x828   : > { %p1846_p6 = scmp.ne.s32.totalorder %s2595_s22, %s1845_s13  ;;  %p1850_p10 = scmp.lt.u32.totalorder %s2595_s22, %s2648_s3 }
 0x829   : > { %p1851_p11 = scmp.lt.u32.totalorder %s1849_s5, %s1845_s13  ;;  %p1853_p13 = scmp.lt.u32.totalorder %s1845_s13, %s2595_s22 }
 0x82a   : > { %p1847_p7 = pnand %p1846_p6, %p2005_p4 }
 0x82b   : > { %p1852_p12 = por %p1851_p11, %p1850_p10 }
 0x82c   : > { %p1848_p9 = pneg %p1847_p7 }
 0x82d   : > { %p1854_p0 = por %p1853_p13, %p1852_p12 }
 0x82f   : > { %p1855_p1 = pnand %p1854_p0, %p1848_p9 }
 0x831   : > { %1858 = shalt.err (!%p1855_p1)
}
 0x832   : > { %s1940_s8 = smov 128   ;;  %s1941_s10 = smov 8  }
 0x833   : > { %1746 = dma.vmem_to_hbm [thread:$0]  (%p2005_p4), %s2597_s20, 256, %s2595_s22, %s2599_s24, %s1940_s8, %s1940_s8, %s1941_s10  }
 0x834 PF: > { %p1752_p2 = scmp.ge.s32.totalorder %s1909_s19, 2  ;;  %s1583_s11 = sand.u32 1, %s1889_s14  }
 0x835   : > { %s1584_s9 = scalar_lea.sflag [#allocation7], %s1583_s11 }
 0x836   : > { %p1749_p3 = pnand %p1752_p2, %p2012_p8 }
 0x838   : > { %1884 = dma.done.wait (!%p1749_p3), %s1584_s9, 256  }
 0x839   : > { %1886 = vsyncadd (!%p1749_p3), %s1584_s9, 4294967040  ;;  %s17_s19 = sadd.s32 1, %s1909_s19   ;;  %s2653_s14 = smov %s1893_s15 }
 0x83a   : > { %p14_p5 = scmp.ge.s32.totalorder %s17_s19, 4   ;;  %s2654_s15 = smov %s1897_s16 }
 0x83b   : > { %s2655_s16 = smov %s2018_s26  ;;  %s2656_s17 = smov %s1905_s18 }
 0x83c   : > { %s2657_s18 = smov %s2659_s21  ;;  %16 = sbr.rel (!%p14_p5) target bundleno = 6 (0x6), region = 78 }
 0x843   :  { %1589 = vsyncpa [#allocation7], 1 }
 0x844   :  { %1591 = vsyncpa [#allocation7 + $0x1], 1 }

</bundles_post_ra>
